<compile_context>
chip_gen: v5e
topology: v5e:2x2
jax: 0.10.0
libtpu: 0.0.40
codegen_flags: <defaults>
</compile_context>

<pallas_src>
import functools

import jax
import jax.numpy as jnp
from jax import lax
from jax.experimental import pallas as pl
from jax.experimental.pallas import tpu as pltpu


# --------------------------------------------------------------------------- helpers

def _divisors(n):
    return [d for d in range(1, n + 1) if n % d == 0]


def _vmem_capacity_bytes():
    """Physical VMEM of the attached TPU, with a conservative (v7x, 64 MiB) fallback."""
    try:
        info = pltpu.get_tpu_info()
        for attr in ("vmem_capacity_bytes", "vmem_bytes", "vmem_size_bytes"):
            val = getattr(info, attr, None)
            if val:
                return int(val)
    except Exception:
        pass
    return 64 * 1024 * 1024


def _pick_tiles(N, C, H, W, use_dense, budget_bytes):
    """Choose (bn, Pt): batch-block and output-pixel-tile sizes.

    Constraints / goals:
      * out block (bn*C, Pt) must be sublane/lane legal: (bn*C) % 8 == 0 or bn == N,
        Pt % 128 == 0 or Pt == P.
      * double-buffered blocks + live in-kernel temporaries fit the VMEM budget.
      * total grid steps >= 2 (ideally >= 4) so v7x's two TensorCores both get work.
      * bn stays small (static unroll of the in-kernel batch loop stays cheap).
    """
    P = H * W

    # Pixel-tile: largest multiple-of-128 divisor of P up to a per-path target.
    target_pt = 256 if use_dense else 1024
    pt_cands = [d for d in _divisors(P) if d % 128 == 0 and d <= target_pt]
    Pt = max(pt_cands) if pt_cands else P          # fall back to the full extent

    def vmem_bytes(bn, pt):
        if use_dense:
            live = 3 * P * pt                      # selection matrix + iota (+ slack)
            img_blk = 2 * bn * C * P               # double-buffered image block
        else:
            live = 2 * (C * H * pt + (H + W) * pt) # tmp + a_x/a_y per live body
            img_blk = 2 * bn * C * H * W
        out_blk = 2 * bn * C * pt
        return 4 * (img_blk + out_blk + 2 * 2 * pt + live)

    cands = [bn for bn in _divisors(N) if (bn * C) % 8 == 0 or bn == N]
    fit = ([bn for bn in cands if vmem_bytes(bn, Pt) <= budget_bytes and bn <= 8]
           or [bn for bn in cands if vmem_bytes(bn, Pt) <= budget_bytes]
           or [min(cands)])
    bn = max(fit)
    for min_steps in (4, 2, 1):
        ok = [b for b in fit if (N // b) * (P // Pt) >= min_steps]
        if ok:
            bn = max(ok)
            break
    # If the whole problem still lands in a single grid step, split the pixel axis so
    # both v7x TensorCores get work and DMA/compute can overlap across steps.
    while (N // bn) * (P // Pt) < 2:
        smaller = [d for d in _divisors(P) if d % 128 == 0 and d < Pt]
        if not smaller:
            break
        Pt = max(smaller)
    return bn, Pt


# --------------------------------------------------------------------------- kernels

def _affine_sample_coords(theta_sm, base, xs, ys, H, W):
    """affine_grid + grid_sample coordinate math (bilinear, border, align_corners=False).

    Returns corner indices and weights, all shaped (1, Pt).  The continuous source
    coordinate is clipped to [0, size-1] BEFORE the floor (PyTorch border semantics);
    do not reorder.
    """
    t00 = theta_sm[base + 0]; t01 = theta_sm[base + 1]; t02 = theta_sm[base + 2]
    t10 = theta_sm[base + 3]; t11 = theta_sm[base + 4]; t12 = theta_sm[base + 5]
    gx = t00 * xs + t01 * ys + t02
    gy = t10 * xs + t11 * ys + t12
    ix = jnp.clip(((gx + 1.0) * W - 1.0) * 0.5, 0.0, W - 1.0)
    iy = jnp.clip(((gy + 1.0) * H - 1.0) * 0.5, 0.0, H - 1.0)
    x0 = jnp.floor(ix); y0 = jnp.floor(iy)
    wx1 = ix - x0; wx0 = 1.0 - wx1
    wy1 = iy - y0; wy0 = 1.0 - wy1
    x0i = x0.astype(jnp.int32); y0i = y0.astype(jnp.int32)
    x1i = jnp.minimum(x0i + 1, W - 1)
    y1i = jnp.minimum(y0i + 1, H - 1)
    return x0i, x1i, y0i, y1i, wx0, wx1, wy0, wy1


def _stn_dense_kernel(H, W, bn, theta_sm, coords_ref, img_ref, out_ref):
    # theta_sm : (6*N,)        SMEM, row-major flattened 2x3 per batch element
    # coords   : (2, Pt)       VMEM, row0 = x-norm, row1 = y-norm for this pixel tile
    # img_ref  : (bn, C, P)    VMEM, natural-layout image, P = H*W (lane-dense, K=P)
    # out_ref  : (bn*C, Pt)    VMEM, lane/sublane-dense output slab
    C = img_ref.shape[1]
    P = img_ref.shape[2]
    Pt = out_ref.shape[1]
    n0 = pl.program_id(0) * bn

    # theta-independent work hoisted out of the per-batch loop
    xs = coords_ref[0:1, :]                                   # (1, Pt)
    ys = coords_ref[1:2, :]
    qq = lax.broadcasted_iota(jnp.int32, (P, Pt), 0)          # source flat pixel index

    # bn is kept small by the wrapper, so a static unroll with static slices is cheap.
    for b in range(bn):
        base = (n0 + b) * 6
        x0i, x1i, y0i, y1i, wx0, wx1, wy0, wy1 = _affine_sample_coords(
            theta_sm, base, xs, ys, H, W)
        i00 = y0i * W + x0i; i01 = y0i * W + x1i
        i10 = y1i * W + x0i; i11 = y1i * W + x1i
        # Additive accumulation: border-clamped coincident corners must SUM weights.
        sel = (jnp.where(qq == i00, wy0 * wx0, 0.0)
               + jnp.where(qq == i01, wy0 * wx1, 0.0)
               + jnp.where(qq == i10, wy1 * wx0, 0.0)
               + jnp.where(qq == i11, wy1 * wx1, 0.0))        # (P, Pt)
        img_b = img_ref[b].astype(jnp.float32)                # (C, P), lane-dense
        res = jnp.dot(img_b, sel, preferred_element_type=jnp.float32)   # (C, Pt) MXU
        out_ref[b * C:(b + 1) * C, :] = res.astype(out_ref.dtype)


def _stn_separable_kernel(H, W, C, bn, theta_sm, coords_ref, img_ref, out_ref):
    # img_ref : (bn, C*H, W)   natural-layout image (free row-major reshape, no transpose)
    # out_ref : (bn*C, Pt)
    Pt = out_ref.shape[1]
    n0 = pl.program_id(0) * bn

    xs = coords_ref[0:1, :]                                   # (1, Pt)
    ys = coords_ref[1:2, :]
    yy = lax.broadcasted_iota(jnp.int32, (H, Pt), 0)
    xx = lax.broadcasted_iota(jnp.int32, (W, Pt), 0)

    for b in range(bn):
        base = (n0 + b) * 6
        x0i, x1i, y0i, y1i, wx0, wx1, wy0, wy1 = _affine_sample_coords(
            theta_sm, base, xs, ys, H, W)
        # Separable bilinear factors (additive: see dense-path comment).
        a_x = jnp.where(xx == x0i, wx0, 0.0) + jnp.where(xx == x1i, wx1, 0.0)  # (W, Pt)
        a_y = jnp.where(yy == y0i, wy0, 0.0) + jnp.where(yy == y1i, wy1, 0.0)  # (H, Pt)
        # W-contraction on the MXU with the image in natural layout.
        img_b = img_ref[b].astype(jnp.float32)                       # (C*H, W)
        tmp = jnp.dot(img_b, a_x, preferred_element_type=jnp.float32)  # (C*H, Pt)
        # TODO(synk): if H % 8 != 0 the (C*H,Pt)->(C,H,Pt) split may insert a relayout
        # copy; pad H in the wrapper if this ever shows on the critical path.
        tmp = tmp.reshape(C, H, Pt)
        res = jnp.sum(tmp * a_y[None, :, :], axis=1)                 # (C, Pt) VPU+XLU
        out_ref[b * C:(b + 1) * C, :] = res.astype(out_ref.dtype)


# --------------------------------------------------------------------------- wrapper

def transformation_2d(img, matrix_2d, *, dense_max_pixels=1024):
    """img: (N, C, H, W) float32, matrix_2d: (N, 2, 3) float32 -> (N, C, H, W)."""
    N, C, H, W = img.shape
    P = H * W
    use_dense = P <= dense_max_pixels

    vmem_cap = _vmem_capacity_bytes()
    vmem_limit = min(vmem_cap * 3 // 4, 100 * 1024 * 1024)     # ~48 MiB v7x, ~96 MiB v5e/v6e
    bn, Pt = _pick_tiles(N, C, H, W, use_dense, vmem_limit - (2 << 20))

    theta_flat = matrix_2d.astype(jnp.float32).reshape(-1)     # (6N,) 1-D SMEM table

    # Normalized pixel-center output coordinates (theta-independent), flat p = h*W + w.
    xs = (2.0 * jnp.arange(W, dtype=jnp.float32) + 1.0) / W - 1.0
    ys = (2.0 * jnp.arange(H, dtype=jnp.float32) + 1.0) / H - 1.0
    coords = jnp.stack([jnp.tile(xs, H), jnp.repeat(ys, W)], axis=0)   # (2, P)

    if use_dense:
        img_in = img.reshape(N, C, P)                          # free row-major reshape
        kernel = functools.partial(_stn_dense_kernel, H, W, bn)
        img_spec = pl.BlockSpec((bn, C, P), lambda n, p, theta: (n, 0, 0))
    else:
        img_in = img.reshape(N, C * H, W)                      # free row-major reshape
        kernel = functools.partial(_stn_separable_kernel, H, W, C, bn)
        img_spec = pl.BlockSpec((bn, C * H, W), lambda n, p, theta: (n, 0, 0))

    out_flat = pl.pallas_call(
        kernel,
        out_shape=jax.ShapeDtypeStruct((N * C, P), img.dtype),
        grid_spec=pltpu.PrefetchScalarGridSpec(
            num_scalar_prefetch=1,                 # theta table lands in SMEM
            grid=(N // bn, P // Pt),
            in_specs=[
                pl.BlockSpec((2, Pt), lambda n, p, theta: (0, p)),   # coords tile
                img_spec,                                            # image block
            ],
            out_specs=pl.BlockSpec((bn * C, Pt), lambda n, p, theta: (n, p)),
        ),
        compiler_params=pltpu.CompilerParams(
            dimension_semantics=("parallel", "parallel"),
            vmem_limit_bytes=int(vmem_limit)),
    )(theta_flat, coords, img_in)
    return out_flat.reshape(N, C, H, W)


# ------------------------------------------------------------------- pure-JAX reference

def _reference_stn(img, theta):
    """affine_grid + grid_sample (bilinear, border, align_corners=False)."""
    N, C, H, W = img.shape
    xs = (2.0 * jnp.arange(W, dtype=jnp.float32) + 1.0) / W - 1.0
    ys = (2.0 * jnp.arange(H, dtype=jnp.float32) + 1.0) / H - 1.0
    X, Y = jnp.meshgrid(xs, ys)                           # (H, W)
    base = jnp.stack([X, Y, jnp.ones_like(X)], axis=-1)   # (H, W, 3)
    grid = jnp.einsum('nij,hwj->nhwi', theta, base)       # (N, H, W, 2)
    gx, gy = grid[..., 0], grid[..., 1]
    ix = jnp.clip(((gx + 1.0) * W - 1.0) * 0.5, 0.0, W - 1.0)
    iy = jnp.clip(((gy + 1.0) * H - 1.0) * 0.5, 0.0, H - 1.0)
    x0 = jnp.floor(ix); y0 = jnp.floor(iy)
    wx1 = ix - x0; wy1 = iy - y0
    x0i = x0.astype(jnp.int32); y0i = y0.astype(jnp.int32)
    x1i = jnp.minimum(x0i + 1, W - 1); y1i = jnp.minimum(y0i + 1, H - 1)
    img_flat = img.reshape(N, C, H * W)

    def gather(yi, xi):
        q = (yi * W + xi).reshape(N, 1, H * W)
        q = jnp.broadcast_to(q, (N, C, H * W))
        return jnp.take_along_axis(img_flat, q, axis=2).reshape(N, C, H, W)

    w = lambda a: a[:, None, :, :]
    return (w((1 - wy1) * (1 - wx1)) * gather(y0i, x0i)
            + w((1 - wy1) * wx1) * gather(y0i, x1i)
            + w(wy1 * (1 - wx1)) * gather(y1i, x0i)
            + w(wy1 * wx1) * gather(y1i, x1i))


# ------------------------------------------------------------------------------ tests

def _run_case(key, N, C, H, W):
    k1, k2 = jax.random.split(key)
    img = jax.random.normal(k1, (N, C, H, W), dtype=jnp.float32)
    identity = jnp.tile(jnp.array([[1.0, 0.0, 0.0], [0.0, 1.0, 0.0]], jnp.float32),
                        (N, 1, 1))
    matrix_2d = identity + 0.2 * jax.random.normal(k2, (N, 2, 3), dtype=jnp.float32)

    out = jax.block_until_ready(transformation_2d(img, matrix_2d))
    ref = _reference_stn(img, matrix_2d)
    assert out.shape == (N, C, H, W)
    err = float(jnp.max(jnp.abs(out - ref)))
    assert jnp.allclose(out, ref, atol=2e-3, rtol=2e-3), (
        f"case N={N} C={C} H={H} W={W}: max abs err {err}")


if __name__ == "__main__":
    keys = jax.random.split(jax.random.PRNGKey(0), 4)
    # Primary small case (dense path; pixel axis split so 2-TC chips get >=2 steps).
    _run_case(keys[0], 2, 4, 16, 16)
    # Review-requested coverage: multi-step grid, bn=8 batch block, dense path.
    _run_case(keys[1], 16, 3, 32, 32)
    # P % 128 != 0 (full-extent pixel tile), dense path.
    _run_case(keys[2], 2, 8, 12, 12)
    # Larger-P separable path: natural-layout image, MXU over W, P-tiled output.
    _run_case(keys[3], 4, 2, 48, 48)
    print("KERNEL_OK")
</pallas_src>

<mosaic_0001>
module attributes {stable_mosaic.version = 11 : i64} {
  func.func @_stn_dense_kernel(%arg0: i32, %arg1: i32, %arg2: memref<12xf32, #tpu.memory_space<smem>>, %arg3: memref<2x128xf32, #tpu.memory_space<vmem>>, %arg4: memref<2x4x256xf32, #tpu.memory_space<vmem>>, %arg5: memref<8x128xf32, #tpu.memory_space<vmem>>) attributes {dimension_semantics = [#tpu.dimension_semantics<parallel>, #tpu.dimension_semantics<parallel>], iteration_bounds = array<i64: 1, 2>, scalar_prefetch = 1 : i64, scratch_operands = 0 : i64, tpu.core_type = #tpu.core_type<tc>, window_params = [{transform_indices = @transform_0, window_bounds = array<i64: 2, 128>}, {transform_indices = @transform_1, window_bounds = array<i64: 2, 4, 256>}, {transform_indices = @transform_2, window_bounds = array<i64: 8, 128>}]} {
    %c2_i32 = arith.constant 2 : i32
    %0 = arith.muli %arg0, %c2_i32 : i32
    %c0 = arith.constant 0 : index
    %c0_0 = arith.constant 0 : index
    %1 = vector.load %arg3[%c0, %c0_0] : memref<2x128xf32, #tpu.memory_space<vmem>>, vector<1x128xf32>
    %c1 = arith.constant 1 : index
    %c0_1 = arith.constant 0 : index
    %2 = vector.load %arg3[%c1, %c0_1] : memref<2x128xf32, #tpu.memory_space<vmem>>, vector<1x128xf32>
    %3 = tpu.iota {dimensions = array<i32: 0>} : vector<256x128xi32>
    %c0_i32 = arith.constant 0 : i32
    %4 = arith.addi %0, %c0_i32 : i32
    %c6_i32 = arith.constant 6 : i32
    %5 = arith.muli %4, %c6_i32 : i32
    %c0_i32_2 = arith.constant 0 : i32
    %6 = arith.addi %5, %c0_i32_2 : i32
    %7 = arith.index_cast %6 : i32 to index
    %8 = memref.load %arg2[%7] : memref<12xf32, #tpu.memory_space<smem>>
    %c1_i32 = arith.constant 1 : i32
    %9 = arith.addi %5, %c1_i32 : i32
    %10 = arith.index_cast %9 : i32 to index
    %11 = memref.load %arg2[%10] : memref<12xf32, #tpu.memory_space<smem>>
    %c2_i32_3 = arith.constant 2 : i32
    %12 = arith.addi %5, %c2_i32_3 : i32
    %13 = arith.index_cast %12 : i32 to index
    %14 = memref.load %arg2[%13] : memref<12xf32, #tpu.memory_space<smem>>
    %c3_i32 = arith.constant 3 : i32
    %15 = arith.addi %5, %c3_i32 : i32
    %16 = arith.index_cast %15 : i32 to index
    %17 = memref.load %arg2[%16] : memref<12xf32, #tpu.memory_space<smem>>
    %c4_i32 = arith.constant 4 : i32
    %18 = arith.addi %5, %c4_i32 : i32
    %19 = arith.index_cast %18 : i32 to index
    %20 = memref.load %arg2[%19] : memref<12xf32, #tpu.memory_space<smem>>
    %c5_i32 = arith.constant 5 : i32
    %21 = arith.addi %5, %c5_i32 : i32
    %22 = arith.index_cast %21 : i32 to index
    %23 = memref.load %arg2[%22] : memref<12xf32, #tpu.memory_space<smem>>
    %24 = vector.broadcast %8 : f32 to vector<1x128xf32>
    %25 = arith.mulf %24, %1 : vector<1x128xf32>
    %26 = vector.broadcast %11 : f32 to vector<1x128xf32>
    %27 = arith.mulf %26, %2 : vector<1x128xf32>
    %28 = arith.addf %25, %27 : vector<1x128xf32>
    %29 = vector.broadcast %14 : f32 to vector<1x128xf32>
    %30 = arith.addf %28, %29 : vector<1x128xf32>
    %31 = vector.broadcast %17 : f32 to vector<1x128xf32>
    %32 = arith.mulf %31, %1 : vector<1x128xf32>
    %33 = vector.broadcast %20 : f32 to vector<1x128xf32>
    %34 = arith.mulf %33, %2 : vector<1x128xf32>
    %35 = arith.addf %32, %34 : vector<1x128xf32>
    %36 = vector.broadcast %23 : f32 to vector<1x128xf32>
    %37 = arith.addf %35, %36 : vector<1x128xf32>
    %cst = arith.constant 1.000000e+00 : f32
    %38 = vector.broadcast %cst : f32 to vector<1x128xf32>
    %39 = arith.addf %30, %38 : vector<1x128xf32>
    %cst_4 = arith.constant 1.600000e+01 : f32
    %40 = vector.broadcast %cst_4 : f32 to vector<1x128xf32>
    %41 = arith.mulf %39, %40 : vector<1x128xf32>
    %cst_5 = arith.constant 1.000000e+00 : f32
    %42 = vector.broadcast %cst_5 : f32 to vector<1x128xf32>
    %43 = arith.subf %41, %42 : vector<1x128xf32>
    %cst_6 = arith.constant 5.000000e-01 : f32
    %44 = vector.broadcast %cst_6 : f32 to vector<1x128xf32>
    %45 = arith.mulf %43, %44 : vector<1x128xf32>
    %cst_7 = arith.constant 0.000000e+00 : f32
    %cst_8 = arith.constant 1.500000e+01 : f32
    %46 = vector.broadcast %cst_7 : f32 to vector<1x128xf32>
    %47 = arith.maximumf %46, %45 : vector<1x128xf32>
    %48 = vector.broadcast %cst_8 : f32 to vector<1x128xf32>
    %49 = arith.minimumf %48, %47 : vector<1x128xf32>
    %cst_9 = arith.constant 1.000000e+00 : f32
    %50 = vector.broadcast %cst_9 : f32 to vector<1x128xf32>
    %51 = arith.addf %37, %50 : vector<1x128xf32>
    %cst_10 = arith.constant 1.600000e+01 : f32
    %52 = vector.broadcast %cst_10 : f32 to vector<1x128xf32>
    %53 = arith.mulf %51, %52 : vector<1x128xf32>
    %cst_11 = arith.constant 1.000000e+00 : f32
    %54 = vector.broadcast %cst_11 : f32 to vector<1x128xf32>
    %55 = arith.subf %53, %54 : vector<1x128xf32>
    %cst_12 = arith.constant 5.000000e-01 : f32
    %56 = vector.broadcast %cst_12 : f32 to vector<1x128xf32>
    %57 = arith.mulf %55, %56 : vector<1x128xf32>
    %cst_13 = arith.constant 0.000000e+00 : f32
    %cst_14 = arith.constant 1.500000e+01 : f32
    %58 = vector.broadcast %cst_13 : f32 to vector<1x128xf32>
    %59 = arith.maximumf %58, %57 : vector<1x128xf32>
    %60 = vector.broadcast %cst_14 : f32 to vector<1x128xf32>
    %61 = arith.minimumf %60, %59 : vector<1x128xf32>
    %62 = math.floor %49 : vector<1x128xf32>
    %63 = math.floor %61 : vector<1x128xf32>
    %64 = arith.subf %49, %62 : vector<1x128xf32>
    %cst_15 = arith.constant 1.000000e+00 : f32
    %65 = vector.broadcast %cst_15 : f32 to vector<1x128xf32>
    %66 = arith.subf %65, %64 : vector<1x128xf32>
    %67 = arith.subf %61, %63 : vector<1x128xf32>
    %cst_16 = arith.constant 1.000000e+00 : f32
    %68 = vector.broadcast %cst_16 : f32 to vector<1x128xf32>
    %69 = arith.subf %68, %67 : vector<1x128xf32>
    %70 = arith.fptosi %62 : vector<1x128xf32> to vector<1x128xi32>
    %71 = arith.fptosi %63 : vector<1x128xf32> to vector<1x128xi32>
    %c1_i32_17 = arith.constant 1 : i32
    %72 = vector.broadcast %c1_i32_17 : i32 to vector<1x128xi32>
    %73 = arith.addi %70, %72 : vector<1x128xi32>
    %c15_i32 = arith.constant 15 : i32
    %74 = vector.broadcast %c15_i32 : i32 to vector<1x128xi32>
    %75 = arith.minsi %73, %74 : vector<1x128xi32>
    %c1_i32_18 = arith.constant 1 : i32
    %76 = vector.broadcast %c1_i32_18 : i32 to vector<1x128xi32>
    %77 = arith.addi %71, %76 : vector<1x128xi32>
    %c15_i32_19 = arith.constant 15 : i32
    %78 = vector.broadcast %c15_i32_19 : i32 to vector<1x128xi32>
    %79 = arith.minsi %77, %78 : vector<1x128xi32>
    %c16_i32 = arith.constant 16 : i32
    %80 = vector.broadcast %c16_i32 : i32 to vector<1x128xi32>
    %81 = arith.muli %71, %80 : vector<1x128xi32>
    %82 = arith.addi %81, %70 : vector<1x128xi32>
    %c16_i32_20 = arith.constant 16 : i32
    %83 = vector.broadcast %c16_i32_20 : i32 to vector<1x128xi32>
    %84 = arith.muli %71, %83 : vector<1x128xi32>
    %85 = arith.addi %84, %75 : vector<1x128xi32>
    %c16_i32_21 = arith.constant 16 : i32
    %86 = vector.broadcast %c16_i32_21 : i32 to vector<1x128xi32>
    %87 = arith.muli %79, %86 : vector<1x128xi32>
    %88 = arith.addi %87, %70 : vector<1x128xi32>
    %c16_i32_22 = arith.constant 16 : i32
    %89 = vector.broadcast %c16_i32_22 : i32 to vector<1x128xi32>
    %90 = arith.muli %79, %89 : vector<1x128xi32>
    %91 = arith.addi %90, %75 : vector<1x128xi32>
    %92 = vector.broadcast %82 : vector<1x128xi32> to vector<256x128xi32>
    %93 = arith.cmpi eq, %3, %92 : vector<256x128xi32>
    %94 = arith.mulf %69, %66 : vector<1x128xf32>
    %cst_23 = arith.constant 0.000000e+00 : f32
    %95 = vector.shape_cast %94 : vector<1x128xf32> to vector<1x128xf32>
    %96 = vector.broadcast %95 : vector<1x128xf32> to vector<256x128xf32>
    %97 = vector.broadcast %cst_23 : f32 to vector<256x128xf32>
    %98 = arith.select %93, %96, %97 : vector<256x128xi1>, vector<256x128xf32>
    %99 = vector.broadcast %85 : vector<1x128xi32> to vector<256x128xi32>
    %100 = arith.cmpi eq, %3, %99 : vector<256x128xi32>
    %101 = arith.mulf %69, %64 : vector<1x128xf32>
    %cst_24 = arith.constant 0.000000e+00 : f32
    %102 = vector.shape_cast %101 : vector<1x128xf32> to vector<1x128xf32>
    %103 = vector.broadcast %102 : vector<1x128xf32> to vector<256x128xf32>
    %104 = vector.broadcast %cst_24 : f32 to vector<256x128xf32>
    %105 = arith.select %100, %103, %104 : vector<256x128xi1>, vector<256x128xf32>
    %106 = arith.addf %98, %105 : vector<256x128xf32>
    %107 = vector.broadcast %88 : vector<1x128xi32> to vector<256x128xi32>
    %108 = arith.cmpi eq, %3, %107 : vector<256x128xi32>
    %109 = arith.mulf %67, %66 : vector<1x128xf32>
    %cst_25 = arith.constant 0.000000e+00 : f32
    %110 = vector.shape_cast %109 : vector<1x128xf32> to vector<1x128xf32>
    %111 = vector.broadcast %110 : vector<1x128xf32> to vector<256x128xf32>
    %112 = vector.broadcast %cst_25 : f32 to vector<256x128xf32>
    %113 = arith.select %108, %111, %112 : vector<256x128xi1>, vector<256x128xf32>
    %114 = arith.addf %106, %113 : vector<256x128xf32>
    %115 = vector.broadcast %91 : vector<1x128xi32> to vector<256x128xi32>
    %116 = arith.cmpi eq, %3, %115 : vector<256x128xi32>
    %117 = arith.mulf %67, %64 : vector<1x128xf32>
    %cst_26 = arith.constant 0.000000e+00 : f32
    %118 = vector.shape_cast %117 : vector<1x128xf32> to vector<1x128xf32>
    %119 = vector.broadcast %118 : vector<1x128xf32> to vector<256x128xf32>
    %120 = vector.broadcast %cst_26 : f32 to vector<256x128xf32>
    %121 = arith.select %116, %119, %120 : vector<256x128xi1>, vector<256x128xf32>
    %122 = arith.addf %114, %121 : vector<256x128xf32>
    %c0_27 = arith.constant 0 : index
    %c0_28 = arith.constant 0 : index
    %c0_29 = arith.constant 0 : index
    %123 = vector.load %arg4[%c0_27, %c0_28, %c0_29] : memref<2x4x256xf32, #tpu.memory_space<vmem>>, vector<1x4x256xf32>
    %124 = vector.shape_cast %123 : vector<1x4x256xf32> to vector<4x256xf32>
    %cst_30 = arith.constant dense<0.000000e+00> : vector<4x128xf32>
    %125 = tpu.matmul %124, %122, %cst_30 {dimension_numbers = #tpu.dot_dimension_numbers<[1], [0], [0], [1], [0, 0, 1, 1], [], []>} : vector<4x256xf32>, vector<256x128xf32>, vector<4x128xf32> -> vector<4x128xf32>
    %c0_31 = arith.constant 0 : index
    %c0_32 = arith.constant 0 : index
    %126 = vector.load %arg5[%c0_31, %c0_32] : memref<8x128xf32, #tpu.memory_space<vmem>>, vector<4x128xf32>
    tpu.vector_store %arg5[%c0_31, %c0_32], %125 {strides = array<i32>} : memref<8x128xf32, #tpu.memory_space<vmem>>, vector<4x128xf32>,
    %c1_i32_33 = arith.constant 1 : i32
    %127 = arith.addi %0, %c1_i32_33 : i32
    %c6_i32_34 = arith.constant 6 : i32
    %128 = arith.muli %127, %c6_i32_34 : i32
    %c0_i32_35 = arith.constant 0 : i32
    %129 = arith.addi %128, %c0_i32_35 : i32
    %130 = arith.index_cast %129 : i32 to index
    %131 = memref.load %arg2[%130] : memref<12xf32, #tpu.memory_space<smem>>
    %c1_i32_36 = arith.constant 1 : i32
    %132 = arith.addi %128, %c1_i32_36 : i32
    %133 = arith.index_cast %132 : i32 to index
    %134 = memref.load %arg2[%133] : memref<12xf32, #tpu.memory_space<smem>>
    %c2_i32_37 = arith.constant 2 : i32
    %135 = arith.addi %128, %c2_i32_37 : i32
    %136 = arith.index_cast %135 : i32 to index
    %137 = memref.load %arg2[%136] : memref<12xf32, #tpu.memory_space<smem>>
    %c3_i32_38 = arith.constant 3 : i32
    %138 = arith.addi %128, %c3_i32_38 : i32
    %139 = arith.index_cast %138 : i32 to index
    %140 = memref.load %arg2[%139] : memref<12xf32, #tpu.memory_space<smem>>
    %c4_i32_39 = arith.constant 4 : i32
    %141 = arith.addi %128, %c4_i32_39 : i32
    %142 = arith.index_cast %141 : i32 to index
    %143 = memref.load %arg2[%142] : memref<12xf32, #tpu.memory_space<smem>>
    %c5_i32_40 = arith.constant 5 : i32
    %144 = arith.addi %128, %c5_i32_40 : i32
    %145 = arith.index_cast %144 : i32 to index
    %146 = memref.load %arg2[%145] : memref<12xf32, #tpu.memory_space<smem>>
    %147 = vector.broadcast %131 : f32 to vector<1x128xf32>
    %148 = arith.mulf %147, %1 : vector<1x128xf32>
    %149 = vector.broadcast %134 : f32 to vector<1x128xf32>
    %150 = arith.mulf %149, %2 : vector<1x128xf32>
    %151 = arith.addf %148, %150 : vector<1x128xf32>
    %152 = vector.broadcast %137 : f32 to vector<1x128xf32>
    %153 = arith.addf %151, %152 : vector<1x128xf32>
    %154 = vector.broadcast %140 : f32 to vector<1x128xf32>
    %155 = arith.mulf %154, %1 : vector<1x128xf32>
    %156 = vector.broadcast %143 : f32 to vector<1x128xf32>
    %157 = arith.mulf %156, %2 : vector<1x128xf32>
    %158 = arith.addf %155, %157 : vector<1x128xf32>
    %159 = vector.broadcast %146 : f32 to vector<1x128xf32>
    %160 = arith.addf %158, %159 : vector<1x128xf32>
    %cst_41 = arith.constant 1.000000e+00 : f32
    %161 = vector.broadcast %cst_41 : f32 to vector<1x128xf32>
    %162 = arith.addf %153, %161 : vector<1x128xf32>
    %cst_42 = arith.constant 1.600000e+01 : f32
    %163 = vector.broadcast %cst_42 : f32 to vector<1x128xf32>
    %164 = arith.mulf %162, %163 : vector<1x128xf32>
    %cst_43 = arith.constant 1.000000e+00 : f32
    %165 = vector.broadcast %cst_43 : f32 to vector<1x128xf32>
    %166 = arith.subf %164, %165 : vector<1x128xf32>
    %cst_44 = arith.constant 5.000000e-01 : f32
    %167 = vector.broadcast %cst_44 : f32 to vector<1x128xf32>
    %168 = arith.mulf %166, %167 : vector<1x128xf32>
    %cst_45 = arith.constant 0.000000e+00 : f32
    %cst_46 = arith.constant 1.500000e+01 : f32
    %169 = vector.broadcast %cst_45 : f32 to vector<1x128xf32>
    %170 = arith.maximumf %169, %168 : vector<1x128xf32>
    %171 = vector.broadcast %cst_46 : f32 to vector<1x128xf32>
    %172 = arith.minimumf %171, %170 : vector<1x128xf32>
    %cst_47 = arith.constant 1.000000e+00 : f32
    %173 = vector.broadcast %cst_47 : f32 to vector<1x128xf32>
    %174 = arith.addf %160, %173 : vector<1x128xf32>
    %cst_48 = arith.constant 1.600000e+01 : f32
    %175 = vector.broadcast %cst_48 : f32 to vector<1x128xf32>
    %176 = arith.mulf %174, %175 : vector<1x128xf32>
    %cst_49 = arith.constant 1.000000e+00 : f32
    %177 = vector.broadcast %cst_49 : f32 to vector<1x128xf32>
    %178 = arith.subf %176, %177 : vector<1x128xf32>
    %cst_50 = arith.constant 5.000000e-01 : f32
    %179 = vector.broadcast %cst_50 : f32 to vector<1x128xf32>
    %180 = arith.mulf %178, %179 : vector<1x128xf32>
    %cst_51 = arith.constant 0.000000e+00 : f32
    %cst_52 = arith.constant 1.500000e+01 : f32
    %181 = vector.broadcast %cst_51 : f32 to vector<1x128xf32>
    %182 = arith.maximumf %181, %180 : vector<1x128xf32>
    %183 = vector.broadcast %cst_52 : f32 to vector<1x128xf32>
    %184 = arith.minimumf %183, %182 : vector<1x128xf32>
    %185 = math.floor %172 : vector<1x128xf32>
    %186 = math.floor %184 : vector<1x128xf32>
    %187 = arith.subf %172, %185 : vector<1x128xf32>
    %cst_53 = arith.constant 1.000000e+00 : f32
    %188 = vector.broadcast %cst_53 : f32 to vector<1x128xf32>
    %189 = arith.subf %188, %187 : vector<1x128xf32>
    %190 = arith.subf %184, %186 : vector<1x128xf32>
    %cst_54 = arith.constant 1.000000e+00 : f32
    %191 = vector.broadcast %cst_54 : f32 to vector<1x128xf32>
    %192 = arith.subf %191, %190 : vector<1x128xf32>
    %193 = arith.fptosi %185 : vector<1x128xf32> to vector<1x128xi32>
    %194 = arith.fptosi %186 : vector<1x128xf32> to vector<1x128xi32>
    %c1_i32_55 = arith.constant 1 : i32
    %195 = vector.broadcast %c1_i32_55 : i32 to vector<1x128xi32>
    %196 = arith.addi %193, %195 : vector<1x128xi32>
    %c15_i32_56 = arith.constant 15 : i32
    %197 = vector.broadcast %c15_i32_56 : i32 to vector<1x128xi32>
    %198 = arith.minsi %196, %197 : vector<1x128xi32>
    %c1_i32_57 = arith.constant 1 : i32
    %199 = vector.broadcast %c1_i32_57 : i32 to vector<1x128xi32>
    %200 = arith.addi %194, %199 : vector<1x128xi32>
    %c15_i32_58 = arith.constant 15 : i32
    %201 = vector.broadcast %c15_i32_58 : i32 to vector<1x128xi32>
    %202 = arith.minsi %200, %201 : vector<1x128xi32>
    %c16_i32_59 = arith.constant 16 : i32
    %203 = vector.broadcast %c16_i32_59 : i32 to vector<1x128xi32>
    %204 = arith.muli %194, %203 : vector<1x128xi32>
    %205 = arith.addi %204, %193 : vector<1x128xi32>
    %c16_i32_60 = arith.constant 16 : i32
    %206 = vector.broadcast %c16_i32_60 : i32 to vector<1x128xi32>
    %207 = arith.muli %194, %206 : vector<1x128xi32>
    %208 = arith.addi %207, %198 : vector<1x128xi32>
    %c16_i32_61 = arith.constant 16 : i32
    %209 = vector.broadcast %c16_i32_61 : i32 to vector<1x128xi32>
    %210 = arith.muli %202, %209 : vector<1x128xi32>
    %211 = arith.addi %210, %193 : vector<1x128xi32>
    %c16_i32_62 = arith.constant 16 : i32
    %212 = vector.broadcast %c16_i32_62 : i32 to vector<1x128xi32>
    %213 = arith.muli %202, %212 : vector<1x128xi32>
    %214 = arith.addi %213, %198 : vector<1x128xi32>
    %215 = vector.broadcast %205 : vector<1x128xi32> to vector<256x128xi32>
    %216 = arith.cmpi eq, %3, %215 : vector<256x128xi32>
    %217 = arith.mulf %192, %189 : vector<1x128xf32>
    %cst_63 = arith.constant 0.000000e+00 : f32
    %218 = vector.shape_cast %217 : vector<1x128xf32> to vector<1x128xf32>
    %219 = vector.broadcast %218 : vector<1x128xf32> to vector<256x128xf32>
    %220 = vector.broadcast %cst_63 : f32 to vector<256x128xf32>
    %221 = arith.select %216, %219, %220 : vector<256x128xi1>, vector<256x128xf32>
    %222 = vector.broadcast %208 : vector<1x128xi32> to vector<256x128xi32>
    %223 = arith.cmpi eq, %3, %222 : vector<256x128xi32>
    %224 = arith.mulf %192, %187 : vector<1x128xf32>
    %cst_64 = arith.constant 0.000000e+00 : f32
    %225 = vector.shape_cast %224 : vector<1x128xf32> to vector<1x128xf32>
    %226 = vector.broadcast %225 : vector<1x128xf32> to vector<256x128xf32>
    %227 = vector.broadcast %cst_64 : f32 to vector<256x128xf32>
    %228 = arith.select %223, %226, %227 : vector<256x128xi1>, vector<256x128xf32>
    %229 = arith.addf %221, %228 : vector<256x128xf32>
    %230 = vector.broadcast %211 : vector<1x128xi32> to vector<256x128xi32>
    %231 = arith.cmpi eq, %3, %230 : vector<256x128xi32>
    %232 = arith.mulf %190, %189 : vector<1x128xf32>
    %cst_65 = arith.constant 0.000000e+00 : f32
    %233 = vector.shape_cast %232 : vector<1x128xf32> to vector<1x128xf32>
    %234 = vector.broadcast %233 : vector<1x128xf32> to vector<256x128xf32>
    %235 = vector.broadcast %cst_65 : f32 to vector<256x128xf32>
    %236 = arith.select %231, %234, %235 : vector<256x128xi1>, vector<256x128xf32>
    %237 = arith.addf %229, %236 : vector<256x128xf32>
    %238 = vector.broadcast %214 : vector<1x128xi32> to vector<256x128xi32>
    %239 = arith.cmpi eq, %3, %238 : vector<256x128xi32>
    %240 = arith.mulf %190, %187 : vector<1x128xf32>
    %cst_66 = arith.constant 0.000000e+00 : f32
    %241 = vector.shape_cast %240 : vector<1x128xf32> to vector<1x128xf32>
    %242 = vector.broadcast %241 : vector<1x128xf32> to vector<256x128xf32>
    %243 = vector.broadcast %cst_66 : f32 to vector<256x128xf32>
    %244 = arith.select %239, %242, %243 : vector<256x128xi1>, vector<256x128xf32>
    %245 = arith.addf %237, %244 : vector<256x128xf32>
    %c1_67 = arith.constant 1 : index
    %c0_68 = arith.constant 0 : index
    %c0_69 = arith.constant 0 : index
    %246 = vector.load %arg4[%c1_67, %c0_68, %c0_69] : memref<2x4x256xf32, #tpu.memory_space<vmem>>, vector<1x4x256xf32>
    %247 = vector.shape_cast %246 : vector<1x4x256xf32> to vector<4x256xf32>
    %cst_70 = arith.constant dense<0.000000e+00> : vector<4x128xf32>
    %248 = tpu.matmul %247, %245, %cst_70 {dimension_numbers = #tpu.dot_dimension_numbers<[1], [0], [0], [1], [0, 0, 1, 1], [], []>} : vector<4x256xf32>, vector<256x128xf32>, vector<4x128xf32> -> vector<4x128xf32>
    %c4 = arith.constant 4 : index
    %c0_71 = arith.constant 0 : index
    %249 = vector.load %arg5[%c4, %c0_71] : memref<8x128xf32, #tpu.memory_space<vmem>>, vector<4x128xf32>
    tpu.vector_store %arg5[%c4, %c0_71], %248 {strides = array<i32>} : memref<8x128xf32, #tpu.memory_space<vmem>>, vector<4x128xf32>,
    return
  }
  func.func @transform_0(%arg0: i32, %arg1: i32, %arg2: memref<12xf32, #tpu.memory_space<smem>>) -> (i32, i32) {
    %c0_i32 = arith.constant 0 : i32
    %c0_i32_0 = arith.constant 0 : i32
    return %c0_i32, %arg1 : i32, i32
  }
  func.func @transform_1(%arg0: i32, %arg1: i32, %arg2: memref<12xf32, #tpu.memory_space<smem>>) -> (i32, i32, i32) {
    %c0_i32 = arith.constant 0 : i32
    %c0_i32_0 = arith.constant 0 : i32
    %c0_i32_1 = arith.constant 0 : i32
    return %arg0, %c0_i32, %c0_i32_0 : i32, i32, i32
  }
  func.func @transform_2(%arg0: i32, %arg1: i32, %arg2: memref<12xf32, #tpu.memory_space<smem>>) -> (i32, i32) {
    %c0_i32 = arith.constant 0 : i32
    return %arg0, %arg1 : i32, i32
  }
}

</mosaic_0001>

<bundles_post_ra>
// kernel: tpu_custom_call.1
= control target key start
LH: loop header
LB: loop body
LE: loop exit
PB: predicated region body
PF: predicated region fallthrough
CT: control target
= control target key end

     0   :  { %s1575_s15 = smov [#allocation3]   ;;  %s2761_s0 = inlined_call_operand.hbm [shape: f32[12], index: 0, kind: input, shape index: {}]   ;;  %s2762_s1 = inlined_call_operand.hbm [shape: f32[2,256], index: 1, kind: input, shape index: {}]   ;;  %s2763_s2 = inlined_call_operand.hbm [shape: f32[2,4,256], index: 2, kind: input, shape index: {}]   ;;  %s2764_s3 = inlined_call_operand.hbm [shape: f32[8,256], index: 3, kind: output, shape index: {}]  }
   0x1   :  { %s9_s14 = sshll.u32 %s2761_s0, 4  ;;  %s10_s14 = int_to_ptr.hbm [resolvable:$true] %s9_s14 }
   0x2   :  { %12 = dma.hbm_to_smem %s10_s14, 16, %s1575_s15, [#allocation2] }
   0x3   :  { %1537 = dma.done.wait [#allocation2], 16 }
   0x4   :  { %1538 = vsyncadd [#allocation2], 4294967280 }
   0x5   :  { %15 = sfence }
   0x6   :  { %16 = vsyncpa [#allocation5], 0 }
   0x7   :  { %18 = vsyncpa [#allocation5 + $0x1], 0 }
   0x8   :  { %19 = vsyncpa [#allocation8], 0 }
   0x9   :  { %20 = vsyncpa [#allocation6], 0 }
   0xa   :  { %22 = vsyncpa [#allocation6 + $0x1], 0  ;;  %s1602_s16 = smov 0   ;;  %s1604_s17 = smov 0  }
   0xb   :  { %s1606_s18 = smov 0   ;;  %s1608_s19 = smov 0  }
   0xc   :  { %s1610_s0 = smov 0   ;;  %s1612_s20 = smov 0  }
   0xd LB: > { %s1299_s21 = sadd.s32 4294967295, %s1573_s20   ;;  %p1301_p0 = scmp.ge.s32.totalorder %s1573_s20, 1  ;;  %s1573_s20 = sphi %s1612_s20, %s28_s20   ;;  %s1569_s0 = sphi %s1610_s0, %s2775_s0   ;;  %s1565_s19 = sphi %s1608_s19, %s2774_s19   ;;  %s1561_s18 = sphi %s1606_s18, %s2773_s18   ;;  %s1557_s17 = sphi %s1604_s17, %s2772_s17   ;;  %s1553_s16 = sphi %s1602_s16, %s2771_s16  }
   0xe   : > { %p1634_p1 = scmp.eq.s32.totalorder %s1299_s21, 0  ;;  %p125_p2 = scmp.lt.s32.totalorder %s1573_s20, 3 }
   0xf   : > { %s140_s25 = sshll.u32 %s2763_s2, 4  ;;  %s1576_s27 = smov [#allocation7]   ;;  %s141_s25 = int_to_ptr.hbm [resolvable:$true] %s140_s25 }
  0x10   : > { %p1642_p3 = pnand %p1301_p0, %p125_p2  ;;  %s142_s28 = sshll.u32 %s1576_s27, 4  ;;  %s143_s28 = int_to_ptr.vmem [resolvable:$true] %s142_s28 }
  0x11   : > { %p1303_p6 = scmp.ge.s32.totalorder %s1573_s20, 2  ;;  %s1577_s29 = smov 128  }
  0x12   : > { %p1345_p4 = pneg %p1642_p3  ;;  %s1578_s30 = smov 8  }
  0x13   : > { %s1300_s4 = sadd.s32 4294967294, %s1573_s20   ;;  %s37_s5 = sadd.s32 1, %s1569_s0 }
  0x14   : > { %p1346_p5 = pnand %p1345_p4, %p1634_p1  ;;  %s47_s6 = sadd.s32 1, %s1561_s18 }
  0x15   : > { %p38_p7 = scmp.ge.s32.totalorder %s37_s5, 2  ;;  %p54_p8 = scmp.ne.s32.totalorder %s1561_s18, %s1557_s17 }
  0x16   : > { %1348 = dma.hbm_to_vmem [thread:$0]  (!%p1346_p5), %s141_s25, 256, %s143_s28, [#allocation8], %s1577_s29, %s1577_s29, %s1578_s30  }
  0x17   : > { %p55_p9 = scmp.eq.s32.totalorder %s1573_s20, 0  ;;  %p60_p10 = scmp.ne.s32.totalorder %s1557_s17, %s1553_s16 }
  0x18   : > { %s2777_s5 = smov (%p38_p7, %s37_s5), 0  ;;  %p112_p13 = scmp.eq.s32.totalorder %s1299_s21, 1 }
  0x19   : > { %p1661_p11 = por %p55_p9, %p54_p8  ;;  %p1667_p12 = por %p1634_p1, %p60_p10 }
  0x1a   : > { %s44_s9 = ssub.s32 %s1569_s0, %s2777_s5  ;;  %p118_p2 = scmp.eq.s32.totalorder %s1300_s4, 1 }
  0x1b   : > { %p45_p0 = scmp.eq.s32.totalorder %s44_s9, 0  ;;  %p1673_p4 = por %p112_p13, %p54_p8 }
  0x1c   : > { %p1358_p5 = scmp.lt.s32.totalorder %s1573_s20, 2  ;;  %p1681_p7 = por %p118_p2, %p60_p10 }
  0x1d   : > { %s1679_s11 = scalar_select %p45_p0, %s1561_s18, %s47_s6  }
  0x1e   : > { %s156_s13 = sand.u32 1, %s1561_s18   ;;  %s1305_s15 = sshll.u32 %s1569_s0, 1 }
  0x1f   : > { %s1304_s14 = sshll.u32 %s156_s13, 1  ;;  %s164_s21 = scalar_lea.hbm %s2762_s1, %s1305_s15 }
  0x20   : > { %s160_s25 = scalar_lea.vmem [#allocation4], %s1304_s14  ;;  %s166_s28 = sshll.u32 %s164_s21, 4  ;;  %s167_s28 = int_to_ptr.hbm [resolvable:$true] %s166_s28 }
  0x21   : > { %s168_s27 = sshll.u32 %s160_s25, 4  ;;  %p1350_p8 = pnand %p1358_p5, %p1661_p11  ;;  %s169_s27 = int_to_ptr.vmem [resolvable:$true] %s168_s27 }
  0x22   : > { %s157_s29 = scalar_lea.sflag [#allocation5], %s156_s13  ;;  %177 = sbr.rel (%p1642_p3) target bundleno = 407 (0x197), region = 28 }
  0x23   : > { %1352 = dma.hbm_to_vmem [thread:$0]  (!%p1350_p8), %s167_s28, 32, %s169_s27, %s157_s29  }
  0x24   : > { %s1695_s30 = sand.u32 (!%p1642_p3), 1, %s1557_s17  }
  0x25   : > { %s1307_s4 = sshll.u32 (!%p1642_p3), %s1695_s30, 1  ;;  %s180_s6 = scalar_lea.sflag (!%p1642_p3), [#allocation5], %s1695_s30 }
  0x26   : > { %s183_s9 = scalar_lea.vmem (!%p1642_p3), [#allocation4], %s1307_s4 }
  0x27   : > { %1540 = dma.done.wait (%p1667_p12), %s180_s6, 32  }
  0x28   : > { %1542 = vsyncadd (%p1667_p12), %s180_s6, 4294967264 }
  0x29   : > { %1544 = dma.done.wait (%p1634_p1), [#allocation8], 256  }
  0x2a   : > { %1546 = vsyncadd (%p1634_p1), [#allocation8], 4294967040  ;;  %s248_s26 = sld [smem:[#allocation3]]  ;;  %v212_v0 = vld [vmem:[%s183_s9] sm:$0x1]  ;;  %v214_v38 = vlaneseq  ;;  %s1309_s28 = sshll.u32 %s1695_s30, 3 }
  0x2b   : > { %s1310_s7 = sld [smem:[#allocation3 + $0x1]]  ;;  %v213_v2 = vld [vmem:[%s183_s9 + $0x1] sm:$0x1]  ;;  %s1326_s29 = sshll.u32 %s1565_s19, 3 }
  0x2c   : > { %s1311_s13 = sld [smem:[#allocation3 + $0x2]]  ;;  %v1707_v47 = vshrl.u32 %v214_v38, 7  ;;  %s209_s4 = scalar_lea.vmem [#allocation9], %s1309_s28 }
  0x2d   : > { %s1312_s14 = sld [smem:[#allocation3 + $0x3]] }
  0x2e   : > { %s1313_s15 = sld [smem:[#allocation3 + $0x4]]  ;;  %v1710_v57 = vadd.s32 120, %v1707_v47  ;;  %v1713_v60 = vadd.s32 248, %v1707_v47  ;;  %v1716_v61 = vadd.s32 112, %v1707_v47 }
  0x2f   : > { %s1314_s23 = sld [smem:[#allocation3 + $0x5]] }
  0x30   : > { %v259_v1 = vstv %s248_s26  ;;  %s1317_s24 = sld [smem:[#allocation3 + $0x6]]  ;;  %s1202_s26 = scalar_lea.hbm %s2764_s3, %s1326_s29 }
  0x31   : > { %v260_v3 = vmul.f32 %v259_v1, %v212_v0  ;;  %v261_v4 = vstv %s1310_s7  ;;  %s1318_s8 = sld [smem:[#allocation3 + $0x7]]  ;;  %s1204_s7 = sshll.u32 %s209_s4, 4  ;;  %s1205_s7 = int_to_ptr.vmem [resolvable:$true] %s1204_s7 }
  0x32   : > { %v262_v5 = vmul.f32 %v261_v4, %v213_v2  ;;  %s1319_s21 = sld [smem:[#allocation3 + $0x8]]  ;;  %v264_v6 = vstv %s1311_s13  ;;  %v1725_v4 = vadd.s32 232, %v1707_v47  ;;  %s1206_s13 = sshll.u32 %s1202_s26, 4  ;;  %s1207_s13 = int_to_ptr.hbm [resolvable:$true] %s1206_s13 }
  0x33   : > { %v266_v7 = vstv %s1312_s14  ;;  %s1320_s25 = sld [smem:[#allocation3 + $0x9]]  ;;  %s1190_s14 = scalar_lea.sflag [#allocation6], %s1695_s30 }
  0x34   : > { %v263_v8 = vadd.f32 %v262_v5, %v260_v3  ;;  %v267_v9 = vmul.f32 %v266_v7, %v212_v0  ;;  %v268_v10 = vstv %s1313_s15  ;;  %s1321_s22 = sld [smem:[#allocation3 + $0xa]]  ;;  %v1722_v3 = vadd.s32 104, %v1707_v47  ;;  %s1499_s15 = sshra.s32 %s1207_s13, 4  ;;  %s1500_s15 = int_to_ptr.hbm [resolvable:$true] %s1499_s15 }
  0x35   : > { %v269_v11 = vmul.f32 %v268_v10, %v213_v2  ;;  %s1322_s27 = sld [smem:[#allocation3 + $0xb]]  ;;  %v271_v13 = vstv %s1314_s23  ;;  %s1501_s23 = scalar_lea.hbm %s1500_s15, 8 }
  0x36   : > { %v265_v12 = vadd.f32 %v264_v6, %v263_v8  ;;  %v730_v14 = vstv %s1317_s24  ;;  %p1502_p1 = scmp.ne.s32.totalorder %s1500_s15, %s1501_s23  ;;  %p1506_p10 = scmp.lt.s32.totalorder %s1500_s15, %s2764_s3 }
  0x37   : > { %v270_v15 = vadd.f32 %v269_v11, %v267_v9  ;;  %v731_v16 = vmul.f32 %v730_v14, %v212_v0  ;;  %v732_v17 = vstv %s1318_s8  ;;  %s1505_s8 = scalar_lea.hbm %s2764_s3, 16 }
  0x38   : > { %v273_v18 = vadd.f32 1.0, %v265_v12  ;;  %v733_v19 = vmul.f32 %v732_v17, %v213_v2  ;;  %v735_v21 = vstv %s1319_s21  ;;  %p1503_p3 = pnand %p1502_p1, %p1673_p4  ;;  %p1507_p11 = scmp.lt.s32.totalorder %s1505_s8, %s1501_s23 }
  0x39   : > { %v272_v20 = vadd.f32 %v271_v13, %v270_v15  ;;  %v737_v22 = vstv %s1320_s25 }
  0x3a   : > { %v274_v23 = vmul.f32 16.0, %v273_v18  ;;  %v734_v24 = vadd.f32 %v733_v19, %v731_v16  ;;  %v738_v25 = vmul.f32 %v737_v22, %v212_v0  ;;  %v739_v26 = vstv %s1321_s22  ;;  %p1504_p9 = pneg %p1503_p3  ;;  %p1508_p12 = por %p1507_p11, %p1506_p10 }
  0x3b   : > { %v279_v27 = vadd.f32 1.0, %v272_v20  ;;  %v740_v28 = vmul.f32 %v739_v26, %v213_v2  ;;  %v742_v31 = vstv %s1322_s27  ;;  %v1719_v2 = vadd.s32 240, %v1707_v47 }
  0x3c   : > { %v1315_v29 = vadd.f32 -1.0, %v274_v23  ;;  %v736_v30 = vadd.f32 %v735_v21, %v734_v24  ;;  %v1728_v19 = vadd.s32 96, %v1707_v47  ;;  %p1509_p13 = pnand %p1508_p12, %p1504_p9 }
  0x3d   : > { %v280_v32 = vmul.f32 16.0, %v279_v27  ;;  %v741_v33 = vadd.f32 %v740_v28, %v738_v25 }
  0x3e   : > { %v276_v34 = vmul.f32 0.5, %v1315_v29  ;;  %v744_v35 = vadd.f32 1.0, %v736_v30 }
  0x3f   : > { %v1316_v36 = vadd.f32 -1.0, %v280_v32  ;;  %v743_v37 = vadd.f32 %v742_v31, %v741_v33 }
  0x40   : > { %v277_v39 = vmax.f32 %v276_v34, 0.0  ;;  %v745_v40 = vmul.f32 16.0, %v744_v35 }
  0x41   : > { %v282_v41 = vmul.f32 0.5, %v1316_v36  ;;  %v750_v42 = vadd.f32 1.0, %v743_v37 }
  0x42   : > { %v278_v43 = vmin.f32 %v277_v39, 15.0  ;;  %v1323_v44 = vadd.f32 -1.0, %v745_v40 }
  0x43   : > { %v283_v45 = vmax.f32 %v282_v41, 0.0  ;;  %v751_v46 = vmul.f32 16.0, %v750_v42 }
  0x44   : > { %v285_v48 = vfloor.f32 %v278_v43  ;;  %v747_v49 = vmul.f32 0.5, %v1323_v44 }
  0x45   : > { %v284_v50 = vmin.f32 %v283_v45, 15.0  ;;  %v1324_v51 = vadd.f32 -1.0, %v751_v46 }
  0x46   : > { %v287_v52 = vsub.f32 %v278_v43, %v285_v48  ;;  %v1330_v53 = vcvt.f32.s32 %v285_v48  ;;  %v748_v54 = vmax.f32 %v747_v49, 0.0 }
  0x47   : > { %v286_v55 = vfloor.f32 %v284_v50  ;;  %v753_v56 = vmul.f32 0.5, %v1324_v51 }
  0x48   : > { %v293_v58 = vadd.s32 1, %v1330_v53  ;;  %v749_v59 = vmin.f32 %v748_v54, 15.0  ;;  %v288_v62 = vsub.f32 1.0, %v287_v52 }
  0x49   : > { %v289_v63 = vsub.f32 %v284_v50, %v286_v55  ;;  %v1332_v0 = vcvt.f32.s32 %v286_v55  ;;  %v754_v1 = vmax.f32 %v753_v56, 0.0 }
  0x4a   : > { %vm294_vm0 = vcmp.lt.s32.totalorder %v293_v58, 15  ;;  %v756_v12 = vfloor.f32 %v749_v59 }
  0x4b   : > { %v290_v5 = vsub.f32 1.0, %v289_v63  ;;  %v295_v6 = vsel %vm294_vm0, %v293_v58, 15  ;;  %v296_v7 = vadd.s32 1, %v1332_v0  ;;  %v299_v8 = vmul.u32 16, %v1332_v0 }
  0x4c   : > { %v504_v9 = vmul.f32 %v289_v63, %v288_v62  ;;  %v603_v10 = vmul.f32 %v289_v63, %v287_v52  ;;  %v755_v11 = vmin.f32 %v754_v1, 15.0  ;;  %v758_v18 = vsub.f32 %v749_v59, %v756_v12 }
  0x4d   : > { %vm297_vm1 = vcmp.lt.s32.totalorder %v296_v7, 15  ;;  %v300_v13 = vadd.s32 %v1330_v53, %v299_v8  ;;  %v301_v14 = vadd.s32 %v299_v8, %v295_v6  ;;  %v338_v15 = vmul.f32 %v290_v5, %v288_v62 }
  0x4e   : > { %v298_v16 = vsel %vm297_vm1, %v296_v7, 15  ;;  %v405_v17 = vmul.f32 %v290_v5, %v287_v52  ;;  %v1738_v25 = vperm.slane %v504_v9, 0  ;;  %v757_v26 = vfloor.f32 %v755_v11 }
  0x4f   : > { %v302_v20 = vmul.u32 16, %v298_v16  ;;  %v1730_v21 = vperm.slane %v300_v13, 0  ;;  %v1732_v22 = vperm.slane %v338_v15, 0  ;;  %v1734_v23 = vperm.slane %v301_v14, 0 }
  0x50   : > { %v1736_v24 = vperm.slane %v405_v17, 0  ;;  %v1334_v27 = vcvt.f32.s32 %v756_v12  ;;  %v1740_v29 = vperm.slane %v603_v10, 0  ;;  %v759_v30 = vsub.f32 1.0, %v758_v18 }
  0x51   : > { %v303_v28 = vadd.s32 %v1330_v53, %v302_v20  ;;  %vm321_vm2 = vcmp.eq.s32.totalorder %v1710_v57, %v1730_v21  ;;  %vm388_vm3 = vcmp.eq.s32.totalorder %v1710_v57, %v1734_v23  ;;  %v760_v31 = vsub.f32 %v755_v11, %v757_v26 }
  0x52   : > { %v1336_v32 = vcvt.f32.s32 %v757_v26  ;;  %v764_v33 = vadd.s32 1, %v1334_v27  ;;  %v304_v34 = vadd.s32 %v302_v20, %v295_v6  ;;  %v355_v36 = vsel %vm321_vm2, %v1732_v22, 0.0 }
  0x53   : > { %v1746_v35 = vperm.slane %v303_v28, 0  ;;  %v422_v37 = vsel %vm388_vm3, %v1736_v24, 0.0  ;;  %v761_v38 = vsub.f32 1.0, %v760_v31  ;;  %v975_v42 = vmul.f32 %v760_v31, %v759_v30 }
  0x54   : > { %vm765_vm4 = vcmp.lt.s32.totalorder %v764_v33, 15  ;;  %v767_v39 = vadd.s32 1, %v1336_v32  ;;  %v770_v40 = vmul.u32 16, %v1336_v32  ;;  %v1074_v43 = vmul.f32 %v760_v31, %v758_v18 }
  0x55   : > { %v766_v41 = vsel %vm765_vm4, %v764_v33, 15  ;;  %vm337_vm5 = vcmp.eq.s32.totalorder %v1713_v60, %v1730_v21  ;;  %v809_v46 = vmul.f32 %v761_v38, %v759_v30  ;;  %v1752_v48 = vperm.slane %v304_v34, 0 }
  0x56   : > { %vm768_vm6 = vcmp.lt.s32.totalorder %v767_v39, 15  ;;  %v771_v44 = vadd.s32 %v1334_v27, %v770_v40  ;;  %v772_v45 = vadd.s32 %v770_v40, %v766_v41  ;;  %v876_v50 = vmul.f32 %v761_v38, %v758_v18 }
  0x57   : > { %v769_v49 = vsel %vm768_vm6, %v767_v39, 15  ;;  %v1754_v51 = vadd.f32 %v422_v37, %v355_v36  ;;  %v1758_v54 = vperm.slane %v809_v46, 0  ;;  %v1764_v58 = vperm.slane %v975_v42, 0 }
  0x58   : > { %v773_v52 = vmul.u32 16, %v769_v49  ;;  %v1756_v53 = vperm.slane %v771_v44, 0  ;;  %v1760_v55 = vperm.slane %v772_v45, 0  ;;  %v1762_v56 = vperm.slane %v876_v50, 0 }
  0x59   : > { %v1766_v59 = vperm.slane %v1074_v43, 0  ;;  %v1772_v62 = vsel %vm337_vm5, %v1732_v22, 0.0  ;;  %vm487_vm2 = vcmp.eq.s32.totalorder %v1710_v57, %v1746_v35  ;;  %vm586_vm3 = vcmp.eq.s32.totalorder %v1710_v57, %v1752_v48 }
  0x5a   : > { %v774_v63 = vadd.s32 %v1334_v27, %v773_v52  ;;  %v775_v0 = vadd.s32 %v773_v52, %v766_v41  ;;  %vm792_vm7 = vcmp.eq.s32.totalorder %v1710_v57, %v1756_v53  ;;  %vm859_vm8 = vcmp.eq.s32.totalorder %v1710_v57, %v1760_v55 }
  0x5b   : > { %v826_v1 = vsel %vm792_vm7, %v1758_v54, 0.0  ;;  %v893_v5 = vsel %vm859_vm8, %v1762_v56, 0.0  ;;  %vm808_vm9 = vcmp.eq.s32.totalorder %v1713_v60, %v1756_v53  ;;  %vm875_vm10 = vcmp.eq.s32.totalorder %v1713_v60, %v1760_v55 }
  0x5c   : > { %v1784_v6 = vperm.slane %v774_v63, 0  ;;  %v1786_v7 = vperm.slane %v775_v0, 0  ;;  %v925_v8 = vadd.f32 %v893_v5, %v826_v1  ;;  %v842_v9 = vsel %vm808_vm9, %v1758_v54, 0.0 }
  0x5d   : > { %v909_v10 = vsel %vm875_vm10, %v1762_v56, 0.0  ;;  %vm791_vm11 = vcmp.eq.s32.totalorder %v1716_v61, %v1756_v53  ;;  %vm858_vm12 = vcmp.eq.s32.totalorder %v1716_v61, %v1760_v55  ;;  %vm807_vm13 = vcmp.eq.s32.totalorder %v1719_v2, %v1756_v53 }
  0x5e   : > { %vm958_vm14 = vcmp.eq.s32.totalorder %v1710_v57, %v1784_v6  ;;  %vm1057_vm15 = vcmp.eq.s32.totalorder %v1710_v57, %v1786_v7  ;;  %v941_v11 = vadd.f32 %v909_v10, %v842_v9  ;;  %vm974_vm0 = vcmp.eq.s32.totalorder %v1713_v60, %v1784_v6 }
  0x5f   : > { %v992_v12 = vsel %vm958_vm14, %v1764_v58, 0.0  ;;  %v1091_v13 = vsel %vm1057_vm15, %v1766_v59, 0.0  ;;  %v1008_v14 = vsel %vm974_vm0, %v1764_v58, 0.0  ;;  %vm1073_vm1 = vcmp.eq.s32.totalorder %v1713_v60, %v1786_v7 }
  0x60   : > { %v1024_v15 = vadd.f32 %v992_v12, %v925_v8  ;;  %v1040_v16 = vadd.f32 %v1008_v14, %v941_v11  ;;  %v1107_v17 = vsel %vm1073_vm1, %v1766_v59, 0.0  ;;  %v825_v18 = vsel %vm791_vm11, %v1758_v54, 0.0 }
  0x61   : > { %v892_v20 = vsel %vm858_vm12, %v1762_v56, 0.0  ;;  %vm957_vm4 = vcmp.eq.s32.totalorder %v1716_v61, %v1784_v6  ;;  %vm1056_vm5 = vcmp.eq.s32.totalorder %v1716_v61, %v1786_v7  ;;  %v841_v26 = vsel %vm807_vm13, %v1758_v54, 0.0 }
  0x62   : > { %v1123_v27 = vadd.f32 %v1091_v13, %v1024_v15  ;;  %v1139_v28 = vadd.f32 %v1107_v17, %v1040_v16  ;;  %v924_v30 = vadd.f32 %v892_v20, %v825_v18  ;;  %v991_v31 = vsel %vm957_vm4, %v1764_v58, 0.0 }
  0x63   : > { %v1090_v32 = vsel %vm1056_vm5, %v1766_v59, 0.0  ;;  %vm874_vm6 = vcmp.eq.s32.totalorder %v1719_v2, %v1760_v55  ;;  %vm973_vm7 = vcmp.eq.s32.totalorder %v1719_v2, %v1784_v6  ;;  %vm1072_vm8 = vcmp.eq.s32.totalorder %v1719_v2, %v1786_v7 }
  0x64   : > { %1148 = vmatpush.msra.mxu2 %v1123_v27  ;;  %1168 = vmatpush.msra.mxu3 %v1139_v28  ;;  %v1023_v33 = vadd.f32 %v991_v31, %v924_v30  ;;  %v908_v34 = vsel %vm874_vm6, %v1762_v56, 0.0  ;;  %v1007_v36 = vsel %vm973_vm7, %v1764_v58, 0.0  ;;  %v1106_v37 = vsel %vm1072_vm8, %v1766_v59, 0.0 }
  0x65   : > { %v940_v38 = vadd.f32 %v908_v34, %v841_v26  ;;  %vm790_vm9 = vcmp.eq.s32.totalorder %v1722_v3, %v1756_v53  ;;  %vm857_vm10 = vcmp.eq.s32.totalorder %v1722_v3, %v1760_v55  ;;  %vm956_vm11 = vcmp.eq.s32.totalorder %v1722_v3, %v1784_v6 }
  0x66   : > { %v1122_v39 = vadd.f32 %v1090_v32, %v1023_v33  ;;  %v824_v40 = vsel %vm790_vm9, %v1758_v54, 0.0  ;;  %v891_v41 = vsel %vm857_vm10, %v1762_v56, 0.0  ;;  %v990_v42 = vsel %vm956_vm11, %v1764_v58, 0.0 }
  0x67   : > { %v1039_v43 = vadd.f32 %v1007_v36, %v940_v38  ;;  %v923_v44 = vadd.f32 %v891_v41, %v824_v40  ;;  %vm1055_vm12 = vcmp.eq.s32.totalorder %v1722_v3, %v1786_v7  ;;  %vm806_vm13 = vcmp.eq.s32.totalorder %v1725_v4, %v1756_v53 }
  0x68   : > { %1149 = vmatpush.msra.mxu2 %v1122_v39  ;;  %v1089_v45 = vsel %vm1055_vm12, %v1766_v59, 0.0  ;;  %v840_v46 = vsel %vm806_vm13, %v1758_v54, 0.0  ;;  %vm873_vm14 = vcmp.eq.s32.totalorder %v1725_v4, %v1760_v55  ;;  %vm972_vm15 = vcmp.eq.s32.totalorder %v1725_v4, %v1784_v6 }
  0x69   : > { %v1138_v49 = vadd.f32 %v1106_v37, %v1039_v43  ;;  %v1022_v50 = vadd.f32 %v990_v42, %v923_v44  ;;  %v907_v52 = vsel %vm873_vm14, %v1762_v56, 0.0  ;;  %v1006_v63 = vsel %vm972_vm15, %v1764_v58, 0.0 }
  0x6a   : > { %v939_v0 = vadd.f32 %v907_v52, %v840_v46  ;;  %vm1071_vm0 = vcmp.eq.s32.totalorder %v1725_v4, %v1786_v7  ;;  %v521_v1 = vsel %vm487_vm2, %v1738_v25, 0.0  ;;  %v620_v5 = vsel %vm586_vm3, %v1740_v29, 0.0 }
  0x6b   : > { %1169 = vmatpush.msra.mxu3 %v1138_v49  ;;  %v1121_v8 = vadd.f32 %v1089_v45, %v1022_v50  ;;  %v1105_v9 = vsel %vm1071_vm0, %v1766_v59, 0.0  ;;  %v553_v10 = vadd.f32 %v521_v1, %v1754_v51  ;;  %vm404_vm1 = vcmp.eq.s32.totalorder %v1713_v60, %v1734_v23 }
  0x6c   : > { %v1038_v11 = vadd.f32 %v1006_v63, %v939_v0  ;;  %v438_v12 = vsel %vm404_vm1, %v1736_v24, 0.0  ;;  %vm503_vm2 = vcmp.eq.s32.totalorder %v1713_v60, %v1746_v35  ;;  %vm602_vm4 = vcmp.eq.s32.totalorder %v1713_v60, %v1752_v48 }
  0x6d   : > { %1150 = vmatpush.msra.mxu2 %v1121_v8  ;;  %v652_v57 = vadd.f32 %v620_v5, %v553_v10  ;;  %v470_v13 = vadd.f32 %v438_v12, %v1772_v62  ;;  %v537_v14 = vsel %vm503_vm2, %v1738_v25, 0.0  ;;  %v636_v51 = vsel %vm602_vm4, %v1740_v29, 0.0 }
  0x6e   : > { %v1137_v15 = vadd.f32 %v1105_v9, %v1038_v11  ;;  %vm789_vm3 = vcmp.eq.s32.totalorder %v1728_v19, %v1756_v53  ;;  %vm856_vm5 = vcmp.eq.s32.totalorder %v1728_v19, %v1760_v55  ;;  %vm955_vm6 = vcmp.eq.s32.totalorder %v1728_v19, %v1784_v6 }
  0x6f   : > { %676 = vmatpush.msra.mxu0 %v652_v57  ;;  %v569_v60 = vadd.f32 %v537_v14, %v470_v13  ;;  %v823_v16 = vsel %vm789_vm3, %v1758_v54, 0.0  ;;  %v890_v62 = vsel %vm856_vm5, %v1762_v56, 0.0  ;;  %v989_v17 = vsel %vm955_vm6, %v1764_v58, 0.0 }
  0x70   : > { %1170 = vmatpush.msra.mxu3 %v1137_v15  ;;  %v922_v18 = vadd.f32 %v890_v62, %v823_v16  ;;  %vm1054_vm7 = vcmp.eq.s32.totalorder %v1728_v19, %v1786_v7  ;;  %v1894_v20 = vadd.s32 224, %v1707_v47  ;;  %vm320_vm8 = vcmp.eq.s32.totalorder %v1716_v61, %v1730_v21 }
  0x71   : > { %v668_v26 = vadd.f32 %v636_v51, %v569_v60  ;;  %v1088_v27 = vsel %vm1054_vm7, %v1766_v59, 0.0  ;;  %v354_v28 = vsel %vm320_vm8, %v1732_v22, 0.0  ;;  %vm387_vm9 = vcmp.eq.s32.totalorder %v1716_v61, %v1734_v23 }
  0x72   : > { %v1021_v30 = vadd.f32 %v989_v17, %v922_v18  ;;  %vm805_vm10 = vcmp.eq.s32.totalorder %v1894_v20, %v1756_v53  ;;  %vm872_vm11 = vcmp.eq.s32.totalorder %v1894_v20, %v1760_v55  ;;  %vm971_vm12 = vcmp.eq.s32.totalorder %v1894_v20, %v1784_v6 }
  0x73   : > { %696 = vmatpush.msra.mxu1 %v668_v26  ;;  %v839_v31 = vsel %vm805_vm10, %v1758_v54, 0.0  ;;  %v906_v32 = vsel %vm872_vm11, %v1762_v56, 0.0  ;;  %v1005_v33 = vsel %vm971_vm12, %v1764_v58, 0.0  ;;  %vm1070_vm13 = vcmp.eq.s32.totalorder %v1894_v20, %v1786_v7 }
  0x74   : > { %v1120_v34 = vadd.f32 %v1088_v27, %v1021_v30  ;;  %v938_v36 = vadd.f32 %v906_v32, %v839_v31  ;;  %v1104_v37 = vsel %vm1070_vm13, %v1766_v59, 0.0  ;;  %v421_v38 = vsel %vm387_vm9, %v1736_v24, 0.0 }
  0x75   : > { %v453_v39 = vadd.f32 %v421_v38, %v354_v28  ;;  %vm486_vm14 = vcmp.eq.s32.totalorder %v1716_v61, %v1746_v35  ;;  %vm585_vm15 = vcmp.eq.s32.totalorder %v1716_v61, %v1752_v48  ;;  %vm336_vm0 = vcmp.eq.s32.totalorder %v1719_v2, %v1730_v21 }
  0x76   : > { %1151 = vmatpush.msra.mxu2 %v1120_v34  ;;  %v1037_v40 = vadd.f32 %v1005_v33, %v938_v36  ;;  %v520_v41 = vsel %vm486_vm14, %v1738_v25, 0.0  ;;  %v619_v42 = vsel %vm585_vm15, %v1740_v29, 0.0  ;;  %v370_v43 = vsel %vm336_vm0, %v1732_v22, 0.0 }
  0x77   : > { %v552_v44 = vadd.f32 %v520_v41, %v453_v39  ;;  %vm403_vm1 = vcmp.eq.s32.totalorder %v1719_v2, %v1734_v23  ;;  %vm502_vm2 = vcmp.eq.s32.totalorder %v1719_v2, %v1746_v35  ;;  %vm601_vm4 = vcmp.eq.s32.totalorder %v1719_v2, %v1752_v48 }
  0x78   : > { %v1136_v61 = vadd.f32 %v1104_v37, %v1037_v40  ;;  %v437_v45 = vsel %vm403_vm1, %v1736_v24, 0.0  ;;  %v536_v46 = vsel %vm502_vm2, %v1738_v25, 0.0  ;;  %v635_v49 = vsel %vm601_vm4, %v1740_v29, 0.0 }
  0x79   : > { %v651_v50 = vadd.f32 %v619_v42, %v552_v44  ;;  %v469_v52 = vadd.f32 %v437_v45, %v370_v43  ;;  %v1934_v63 = vadd.s32 88, %v1707_v47  ;;  %v1937_v0 = vadd.s32 216, %v1707_v47 }
  0x7a   : > { %1171 = vmatpush.msra.mxu3 %v1136_v61  ;;  %vm319_vm3 = vcmp.eq.s32.totalorder %v1722_v3, %v1730_v21  ;;  %vm386_vm5 = vcmp.eq.s32.totalorder %v1722_v3, %v1734_v23  ;;  %vm485_vm6 = vcmp.eq.s32.totalorder %v1722_v3, %v1746_v35  ;;  %vm584_vm7 = vcmp.eq.s32.totalorder %v1722_v3, %v1752_v48 }
  0x7b   : > { %677 = vmatpush.msra.mxu0 %v651_v50  ;;  %v568_v2 = vadd.f32 %v536_v46, %v469_v52  ;;  %vm788_vm8 = vcmp.eq.s32.totalorder %v1934_v63, %v1756_v53  ;;  %vm855_vm9 = vcmp.eq.s32.totalorder %v1934_v63, %v1760_v55  ;;  %vm954_vm10 = vcmp.eq.s32.totalorder %v1934_v63, %v1784_v6 }
  0x7c   : > { %v822_v1 = vsel %vm788_vm8, %v1758_v54, 0.0  ;;  %v889_v5 = vsel %vm855_vm9, %v1762_v56, 0.0  ;;  %v988_v8 = vsel %vm954_vm10, %v1764_v58, 0.0  ;;  %vm1053_vm11 = vcmp.eq.s32.totalorder %v1934_v63, %v1786_v7 }
  0x7d   : > { %v667_v9 = vadd.f32 %v635_v49, %v568_v2  ;;  %v921_v10 = vadd.f32 %v889_v5, %v822_v1  ;;  %v1087_v11 = vsel %vm1053_vm11, %v1766_v59, 0.0  ;;  %vm804_vm12 = vcmp.eq.s32.totalorder %v1937_v0, %v1756_v53 }
  0x7e   : > { %v838_v12 = vsel %vm804_vm12, %v1758_v54, 0.0  ;;  %vm871_vm13 = vcmp.eq.s32.totalorder %v1937_v0, %v1760_v55  ;;  %vm970_vm14 = vcmp.eq.s32.totalorder %v1937_v0, %v1784_v6  ;;  %vm1069_vm15 = vcmp.eq.s32.totalorder %v1937_v0, %v1786_v7 }
  0x7f   : > { %697 = vmatpush.msra.mxu1 %v667_v9  ;;  %v1020_v57 = vadd.f32 %v988_v8, %v921_v10  ;;  %v905_v13 = vsel %vm871_vm13, %v1762_v56, 0.0  ;;  %v1004_v14 = vsel %vm970_vm14, %v1764_v58, 0.0  ;;  %v1103_v51 = vsel %vm1069_vm15, %v1766_v59, 0.0 }
  0x80   : > { %v937_v15 = vadd.f32 %v905_v13, %v838_v12  ;;  %v353_v60 = vsel %vm319_vm3, %v1732_v22, 0.0  ;;  %v420_v16 = vsel %vm386_vm5, %v1736_v24, 0.0  ;;  %v519_v62 = vsel %vm485_vm6, %v1738_v25, 0.0 }
  0x81   : > { %v1119_v17 = vadd.f32 %v1087_v11, %v1020_v57  ;;  %v452_v18 = vadd.f32 %v420_v16, %v353_v60  ;;  %v618_v26 = vsel %vm584_vm7, %v1740_v29, 0.0  ;;  %vm335_vm0 = vcmp.eq.s32.totalorder %v1725_v4, %v1730_v21 }
  0x82   : > { %v1036_v27 = vadd.f32 %v1004_v14, %v937_v15  ;;  %v369_v28 = vsel %vm335_vm0, %v1732_v22, 0.0  ;;  %vm402_vm1 = vcmp.eq.s32.totalorder %v1725_v4, %v1734_v23  ;;  %vm501_vm2 = vcmp.eq.s32.totalorder %v1725_v4, %v1746_v35 }
  0x83   : > { %1152 = vmatpush.msra.mxu2 %v1119_v17  ;;  %v551_v30 = vadd.f32 %v519_v62, %v452_v18  ;;  %v436_v31 = vsel %vm402_vm1, %v1736_v24, 0.0  ;;  %v535_v32 = vsel %vm501_vm2, %v1738_v25, 0.0  ;;  %vm600_vm4 = vcmp.eq.s32.totalorder %v1725_v4, %v1752_v48 }
  0x84   : > { %v1135_v3 = vadd.f32 %v1103_v51, %v1036_v27  ;;  %v468_v33 = vadd.f32 %v436_v31, %v369_v28  ;;  %v634_v34 = vsel %vm600_vm4, %v1740_v29, 0.0  ;;  %v2000_v36 = vadd.s32 80, %v1707_v47 }
  0x85   : > { %v650_v37 = vadd.f32 %v618_v26, %v551_v30  ;;  %v2003_v38 = vadd.s32 208, %v1707_v47  ;;  %vm318_vm3 = vcmp.eq.s32.totalorder %v1728_v19, %v1730_v21  ;;  %vm385_vm5 = vcmp.eq.s32.totalorder %v1728_v19, %v1734_v23 }
  0x86   : > { %1172 = vmatpush.msra.mxu3 %v1135_v3  ;;  %v567_v39 = vadd.f32 %v535_v32, %v468_v33  ;;  %vm787_vm6 = vcmp.eq.s32.totalorder %v2000_v36, %v1756_v53  ;;  %vm854_vm7 = vcmp.eq.s32.totalorder %v2000_v36, %v1760_v55  ;;  %vm953_vm8 = vcmp.eq.s32.totalorder %v2000_v36, %v1784_v6 }
  0x87   : > { %678 = vmatpush.msra.mxu0 %v650_v37  ;;  %v821_v4 = vsel %vm787_vm6, %v1758_v54, 0.0  ;;  %v888_v40 = vsel %vm854_vm7, %v1762_v56, 0.0  ;;  %v987_v41 = vsel %vm953_vm8, %v1764_v58, 0.0  ;;  %vm1052_vm9 = vcmp.eq.s32.totalorder %v2000_v36, %v1786_v7 }
  0x88   : > { %v666_v42 = vadd.f32 %v634_v34, %v567_v39  ;;  %v920_v43 = vadd.f32 %v888_v40, %v821_v4  ;;  %v1086_v44 = vsel %vm1052_vm9, %v1766_v59, 0.0  ;;  %vm803_vm10 = vcmp.eq.s32.totalorder %v2003_v38, %v1756_v53 }
  0x89   : > { %v837_v61 = vsel %vm803_vm10, %v1758_v54, 0.0  ;;  %vm870_vm11 = vcmp.eq.s32.totalorder %v2003_v38, %v1760_v55  ;;  %vm969_vm12 = vcmp.eq.s32.totalorder %v2003_v38, %v1784_v6  ;;  %vm1068_vm13 = vcmp.eq.s32.totalorder %v2003_v38, %v1786_v7 }
  0x8a   : > { %698 = vmatpush.msra.mxu1 %v666_v42  ;;  %v1019_v45 = vadd.f32 %v987_v41, %v920_v43  ;;  %v904_v46 = vsel %vm870_vm11, %v1762_v56, 0.0  ;;  %v1003_v49 = vsel %vm969_vm12, %v1764_v58, 0.0  ;;  %v1102_v50 = vsel %vm1068_vm13, %v1766_v59, 0.0 }
  0x8b   : > { %v936_v52 = vadd.f32 %v904_v46, %v837_v61  ;;  %v352_v2 = vsel %vm318_vm3, %v1732_v22, 0.0  ;;  %v419_v1 = vsel %vm385_vm5, %v1736_v24, 0.0  ;;  %vm484_vm14 = vcmp.eq.s32.totalorder %v1728_v19, %v1746_v35 }
  0x8c   : > { %v1118_v5 = vadd.f32 %v1086_v44, %v1019_v45  ;;  %v451_v8 = vadd.f32 %v419_v1, %v352_v2  ;;  %v518_v9 = vsel %vm484_vm14, %v1738_v25, 0.0  ;;  %vm583_vm15 = vcmp.eq.s32.totalorder %v1728_v19, %v1752_v48 }
  0x8d   : > { %v1035_v10 = vadd.f32 %v1003_v49, %v936_v52  ;;  %v617_v11 = vsel %vm583_vm15, %v1740_v29, 0.0  ;;  %vm334_vm0 = vcmp.eq.s32.totalorder %v1894_v20, %v1730_v21  ;;  %vm401_vm1 = vcmp.eq.s32.totalorder %v1894_v20, %v1734_v23 }
  0x8e   : > { %1153 = vmatpush.msra.mxu2 %v1118_v5  ;;  %v550_v12 = vadd.f32 %v518_v9, %v451_v8  ;;  %v368_v57 = vsel %vm334_vm0, %v1732_v22, 0.0  ;;  %v435_v13 = vsel %vm401_vm1, %v1736_v24, 0.0  ;;  %vm500_vm2 = vcmp.eq.s32.totalorder %v1894_v20, %v1746_v35 }
  0x8f   : > { %v1134_v14 = vadd.f32 %v1102_v50, %v1035_v10  ;;  %v467_v19 = vadd.f32 %v435_v13, %v368_v57  ;;  %v534_v51 = vsel %vm500_vm2, %v1738_v25, 0.0  ;;  %vm599_vm4 = vcmp.eq.s32.totalorder %v1894_v20, %v1752_v48 }
  0x90   : > { %v649_v15 = vadd.f32 %v617_v11, %v550_v12  ;;  %v633_v60 = vsel %vm599_vm4, %v1740_v29, 0.0  ;;  %v2060_v16 = vadd.s32 72, %v1707_v47  ;;  %v2063_v62 = vadd.s32 200, %v1707_v47 }
  0x91   : > { %1173 = vmatpush.msra.mxu3 %v1134_v14  ;;  %v566_v17 = vadd.f32 %v534_v51, %v467_v19  ;;  %vm317_vm3 = vcmp.eq.s32.totalorder %v1934_v63, %v1730_v21  ;;  %vm384_vm5 = vcmp.eq.s32.totalorder %v1934_v63, %v1734_v23  ;;  %vm483_vm6 = vcmp.eq.s32.totalorder %v1934_v63, %v1746_v35 }
  0x92   : > { %679 = vmatpush.msra.mxu0 %v649_v15  ;;  %vm786_vm7 = vcmp.eq.s32.totalorder %v2060_v16, %v1756_v53  ;;  %vm853_vm8 = vcmp.eq.s32.totalorder %v2060_v16, %v1760_v55  ;;  %vm952_vm9 = vcmp.eq.s32.totalorder %v2060_v16, %v1784_v6  ;;  %vm1051_vm10 = vcmp.eq.s32.totalorder %v2060_v16, %v1786_v7 }
  0x93   : > { %v665_v20 = vadd.f32 %v633_v60, %v566_v17  ;;  %v820_v18 = vsel %vm786_vm7, %v1758_v54, 0.0  ;;  %v887_v26 = vsel %vm853_vm8, %v1762_v56, 0.0  ;;  %v986_v27 = vsel %vm952_vm9, %v1764_v58, 0.0 }
  0x94   : > { %v919_v28 = vadd.f32 %v887_v26, %v820_v18  ;;  %v1085_v30 = vsel %vm1051_vm10, %v1766_v59, 0.0  ;;  %vm802_vm11 = vcmp.eq.s32.totalorder %v2063_v62, %v1756_v53  ;;  %vm869_vm12 = vcmp.eq.s32.totalorder %v2063_v62, %v1760_v55 }
  0x95   : > { %699 = vmatpush.msra.mxu1 %v665_v20  ;;  %v836_v31 = vsel %vm802_vm11, %v1758_v54, 0.0  ;;  %v903_v32 = vsel %vm869_vm12, %v1762_v56, 0.0  ;;  %vm968_vm13 = vcmp.eq.s32.totalorder %v2063_v62, %v1784_v6  ;;  %vm1067_vm14 = vcmp.eq.s32.totalorder %v2063_v62, %v1786_v7 }
  0x96   : > { %v1018_v3 = vadd.f32 %v986_v27, %v919_v28  ;;  %v935_v33 = vadd.f32 %v903_v32, %v836_v31  ;;  %v1002_v34 = vsel %vm968_vm13, %v1764_v58, 0.0  ;;  %v1101_v37 = vsel %vm1067_vm14, %v1766_v59, 0.0 }
  0x97   : > { %v351_v39 = vsel %vm317_vm3, %v1732_v22, 0.0  ;;  %v418_v4 = vsel %vm384_vm5, %v1736_v24, 0.0  ;;  %v517_v40 = vsel %vm483_vm6, %v1738_v25, 0.0  ;;  %vm582_vm15 = vcmp.eq.s32.totalorder %v1934_v63, %v1752_v48 }
  0x98   : > { %v1117_v41 = vadd.f32 %v1085_v30, %v1018_v3  ;;  %v1034_v42 = vadd.f32 %v1002_v34, %v935_v33  ;;  %v450_v43 = vadd.f32 %v418_v4, %v351_v39  ;;  %v616_v44 = vsel %vm582_vm15, %v1740_v29, 0.0 }
  0x99   : > { %vm333_vm0 = vcmp.eq.s32.totalorder %v1937_v0, %v1730_v21  ;;  %vm400_vm1 = vcmp.eq.s32.totalorder %v1937_v0, %v1734_v23  ;;  %vm499_vm2 = vcmp.eq.s32.totalorder %v1937_v0, %v1746_v35  ;;  %vm598_vm4 = vcmp.eq.s32.totalorder %v1937_v0, %v1752_v48 }
  0x9a   : > { %1154 = vmatpush.msra.mxu2 %v1117_v41  ;;  %v1133_v61 = vadd.f32 %v1101_v37, %v1034_v42  ;;  %v549_v63 = vadd.f32 %v517_v40, %v450_v43  ;;  %v367_v45 = vsel %vm333_vm0, %v1732_v22, 0.0  ;;  %v434_v46 = vsel %vm400_vm1, %v1736_v24, 0.0 }
  0x9b   : > { %v466_v49 = vadd.f32 %v434_v46, %v367_v45  ;;  %v533_v50 = vsel %vm499_vm2, %v1738_v25, 0.0  ;;  %v632_v52 = vsel %vm598_vm4, %v1740_v29, 0.0  ;;  %v2123_v2 = vadd.s32 64, %v1707_v47 }
  0x9c   : > { %1174 = vmatpush.msra.mxu3 %v1133_v61  ;;  %v648_v1 = vadd.f32 %v616_v44, %v549_v63  ;;  %v2126_v5 = vadd.s32 192, %v1707_v47  ;;  %vm316_vm3 = vcmp.eq.s32.totalorder %v2000_v36, %v1730_v21  ;;  %vm383_vm5 = vcmp.eq.s32.totalorder %v2000_v36, %v1734_v23 }
  0x9d   : > { %v565_v0 = vadd.f32 %v533_v50, %v466_v49  ;;  %vm785_vm6 = vcmp.eq.s32.totalorder %v2123_v2, %v1756_v53  ;;  %vm852_vm7 = vcmp.eq.s32.totalorder %v2123_v2, %v1760_v55  ;;  %vm951_vm8 = vcmp.eq.s32.totalorder %v2123_v2, %v1784_v6 }
  0x9e   : > { %680 = vmatpush.msra.mxu0 %v648_v1  ;;  %v819_v8 = vsel %vm785_vm6, %v1758_v54, 0.0  ;;  %v886_v9 = vsel %vm852_vm7, %v1762_v56, 0.0  ;;  %v985_v10 = vsel %vm951_vm8, %v1764_v58, 0.0  ;;  %vm1050_vm9 = vcmp.eq.s32.totalorder %v2123_v2, %v1786_v7 }
  0x9f   : > { %v664_v11 = vadd.f32 %v632_v52, %v565_v0  ;;  %v918_v12 = vadd.f32 %v886_v9, %v819_v8  ;;  %v1084_v57 = vsel %vm1050_vm9, %v1766_v59, 0.0  ;;  %vm801_vm10 = vcmp.eq.s32.totalorder %v2126_v5, %v1756_v53 }
  0xa0   : > { %v835_v13 = vsel %vm801_vm10, %v1758_v54, 0.0  ;;  %vm868_vm11 = vcmp.eq.s32.totalorder %v2126_v5, %v1760_v55  ;;  %vm967_vm12 = vcmp.eq.s32.totalorder %v2126_v5, %v1784_v6  ;;  %vm1066_vm13 = vcmp.eq.s32.totalorder %v2126_v5, %v1786_v7 }
  0xa1   : > { %700 = vmatpush.msra.mxu1 %v664_v11  ;;  %v1017_v14 = vadd.f32 %v985_v10, %v918_v12  ;;  %v902_v19 = vsel %vm868_vm11, %v1762_v56, 0.0  ;;  %v1001_v51 = vsel %vm967_vm12, %v1764_v58, 0.0  ;;  %v1100_v15 = vsel %vm1066_vm13, %v1766_v59, 0.0 }
  0xa2   : > { %v934_v60 = vadd.f32 %v902_v19, %v835_v13  ;;  %v350_v17 = vsel %vm316_vm3, %v1732_v22, 0.0  ;;  %v417_v20 = vsel %vm383_vm5, %v1736_v24, 0.0  ;;  %vm482_vm14 = vcmp.eq.s32.totalorder %v2000_v36, %v1746_v35 }
  0xa3   : > { %v1116_v18 = vadd.f32 %v1084_v57, %v1017_v14  ;;  %v449_v26 = vadd.f32 %v417_v20, %v350_v17  ;;  %v516_v27 = vsel %vm482_vm14, %v1738_v25, 0.0  ;;  %vm581_vm15 = vcmp.eq.s32.totalorder %v2000_v36, %v1752_v48 }
  0xa4   : > { %v1033_v28 = vadd.f32 %v1001_v51, %v934_v60  ;;  %v615_v30 = vsel %vm581_vm15, %v1740_v29, 0.0  ;;  %vm332_vm0 = vcmp.eq.s32.totalorder %v2003_v38, %v1730_v21  ;;  %vm399_vm1 = vcmp.eq.s32.totalorder %v2003_v38, %v1734_v23 }
  0xa5   : > { %1155 = vmatpush.msra.mxu2 %v1116_v18  ;;  %v548_v31 = vadd.f32 %v516_v27, %v449_v26  ;;  %v366_v32 = vsel %vm332_vm0, %v1732_v22, 0.0  ;;  %v433_v3 = vsel %vm399_vm1, %v1736_v24, 0.0  ;;  %vm498_vm2 = vcmp.eq.s32.totalorder %v2003_v38, %v1746_v35 }
  0xa6   : > { %v1132_v33 = vadd.f32 %v1100_v15, %v1033_v28  ;;  %v465_v36 = vadd.f32 %v433_v3, %v366_v32  ;;  %v532_v34 = vsel %vm498_vm2, %v1738_v25, 0.0  ;;  %vm597_vm4 = vcmp.eq.s32.totalorder %v2003_v38, %v1752_v48 }
  0xa7   : > { %v647_v37 = vadd.f32 %v615_v30, %v548_v31  ;;  %v631_v39 = vsel %vm597_vm4, %v1740_v29, 0.0  ;;  %v2183_v4 = vadd.s32 56, %v1707_v47  ;;  %v2186_v40 = vadd.s32 184, %v1707_v47 }
  0xa8   : > { %1175 = vmatpush.msra.mxu3 %v1132_v33  ;;  %v564_v41 = vadd.f32 %v532_v34, %v465_v36  ;;  %vm315_vm3 = vcmp.eq.s32.totalorder %v2060_v16, %v1730_v21  ;;  %vm382_vm5 = vcmp.eq.s32.totalorder %v2060_v16, %v1734_v23  ;;  %vm481_vm6 = vcmp.eq.s32.totalorder %v2060_v16, %v1746_v35 }
  0xa9   : > { %681 = vmatpush.msra.mxu0 %v647_v37  ;;  %vm784_vm7 = vcmp.eq.s32.totalorder %v2183_v4, %v1756_v53  ;;  %vm851_vm8 = vcmp.eq.s32.totalorder %v2183_v4, %v1760_v55  ;;  %vm950_vm9 = vcmp.eq.s32.totalorder %v2183_v4, %v1784_v6  ;;  %vm1049_vm10 = vcmp.eq.s32.totalorder %v2183_v4, %v1786_v7 }
  0xaa   : > { %v663_v38 = vadd.f32 %v631_v39, %v564_v41  ;;  %v818_v42 = vsel %vm784_vm7, %v1758_v54, 0.0  ;;  %v885_v43 = vsel %vm851_vm8, %v1762_v56, 0.0  ;;  %v984_v44 = vsel %vm950_vm9, %v1764_v58, 0.0 }
  0xab   : > { %v917_v61 = vadd.f32 %v885_v43, %v818_v42  ;;  %v1083_v63 = vsel %vm1049_vm10, %v1766_v59, 0.0  ;;  %vm800_vm11 = vcmp.eq.s32.totalorder %v2186_v40, %v1756_v53  ;;  %vm867_vm12 = vcmp.eq.s32.totalorder %v2186_v40, %v1760_v55 }
  0xac   : > { %701 = vmatpush.msra.mxu1 %v663_v38  ;;  %v834_v45 = vsel %vm800_vm11, %v1758_v54, 0.0  ;;  %v901_v46 = vsel %vm867_vm12, %v1762_v56, 0.0  ;;  %vm966_vm13 = vcmp.eq.s32.totalorder %v2186_v40, %v1784_v6  ;;  %vm1065_vm14 = vcmp.eq.s32.totalorder %v2186_v40, %v1786_v7 }
  0xad   : > { %v1016_v49 = vadd.f32 %v984_v44, %v917_v61  ;;  %v933_v50 = vadd.f32 %v901_v46, %v834_v45  ;;  %v1000_v52 = vsel %vm966_vm13, %v1764_v58, 0.0  ;;  %v1099_v1 = vsel %vm1065_vm14, %v1766_v59, 0.0 }
  0xae   : > { %v349_v0 = vsel %vm315_vm3, %v1732_v22, 0.0  ;;  %v416_v8 = vsel %vm382_vm5, %v1736_v24, 0.0  ;;  %v515_v9 = vsel %vm481_vm6, %v1738_v25, 0.0  ;;  %vm580_vm15 = vcmp.eq.s32.totalorder %v2060_v16, %v1752_v48 }
  0xaf   : > { %v1115_v10 = vadd.f32 %v1083_v63, %v1016_v49  ;;  %v1032_v11 = vadd.f32 %v1000_v52, %v933_v50  ;;  %v448_v12 = vadd.f32 %v416_v8, %v349_v0  ;;  %v614_v57 = vsel %vm580_vm15, %v1740_v29, 0.0 }
  0xb0   : > { %vm331_vm0 = vcmp.eq.s32.totalorder %v2063_v62, %v1730_v21  ;;  %vm398_vm1 = vcmp.eq.s32.totalorder %v2063_v62, %v1734_v23  ;;  %vm497_vm2 = vcmp.eq.s32.totalorder %v2063_v62, %v1746_v35  ;;  %vm596_vm4 = vcmp.eq.s32.totalorder %v2063_v62, %v1752_v48 }
  0xb1   : > { %1156 = vmatpush.msra.mxu2 %v1115_v10  ;;  %v1131_v13 = vadd.f32 %v1099_v1, %v1032_v11  ;;  %v547_v16 = vadd.f32 %v515_v9, %v448_v12  ;;  %v365_v14 = vsel %vm331_vm0, %v1732_v22, 0.0  ;;  %v432_v19 = vsel %vm398_vm1, %v1736_v24, 0.0 }
  0xb2   : > { %v464_v51 = vadd.f32 %v432_v19, %v365_v14  ;;  %v531_v15 = vsel %vm497_vm2, %v1738_v25, 0.0  ;;  %v630_v60 = vsel %vm596_vm4, %v1740_v29, 0.0  ;;  %v2246_v17 = vadd.s32 48, %v1707_v47 }
  0xb3   : > { %1176 = vmatpush.msra.mxu3 %v1131_v13  ;;  %v646_v20 = vadd.f32 %v614_v57, %v547_v16  ;;  %v2249_v18 = vadd.s32 176, %v1707_v47  ;;  %vm314_vm3 = vcmp.eq.s32.totalorder %v2123_v2, %v1730_v21  ;;  %vm381_vm5 = vcmp.eq.s32.totalorder %v2123_v2, %v1734_v23 }
  0xb4   : > { %v563_v62 = vadd.f32 %v531_v15, %v464_v51  ;;  %vm783_vm6 = vcmp.eq.s32.totalorder %v2246_v17, %v1756_v53  ;;  %vm850_vm7 = vcmp.eq.s32.totalorder %v2246_v17, %v1760_v55  ;;  %vm949_vm8 = vcmp.eq.s32.totalorder %v2246_v17, %v1784_v6 }
  0xb5   : > { %682 = vmatpush.msra.mxu0 %v646_v20  ;;  %v817_v26 = vsel %vm783_vm6, %v1758_v54, 0.0  ;;  %v884_v27 = vsel %vm850_vm7, %v1762_v56, 0.0  ;;  %v983_v28 = vsel %vm949_vm8, %v1764_v58, 0.0  ;;  %vm1048_vm9 = vcmp.eq.s32.totalorder %v2246_v17, %v1786_v7 }
  0xb6   : > { %v662_v30 = vadd.f32 %v630_v60, %v563_v62  ;;  %v916_v31 = vadd.f32 %v884_v27, %v817_v26  ;;  %v1082_v32 = vsel %vm1048_vm9, %v1766_v59, 0.0  ;;  %vm799_vm10 = vcmp.eq.s32.totalorder %v2249_v18, %v1756_v53 }
  0xb7   : > { %v833_v3 = vsel %vm799_vm10, %v1758_v54, 0.0  ;;  %vm866_vm11 = vcmp.eq.s32.totalorder %v2249_v18, %v1760_v55  ;;  %vm965_vm12 = vcmp.eq.s32.totalorder %v2249_v18, %v1784_v6  ;;  %vm1064_vm13 = vcmp.eq.s32.totalorder %v2249_v18, %v1786_v7 }
  0xb8   : > { %702 = vmatpush.msra.mxu1 %v662_v30  ;;  %v1015_v33 = vadd.f32 %v983_v28, %v916_v31  ;;  %v900_v36 = vsel %vm866_vm11, %v1762_v56, 0.0  ;;  %v999_v34 = vsel %vm965_vm12, %v1764_v58, 0.0  ;;  %v1098_v37 = vsel %vm1064_vm13, %v1766_v59, 0.0 }
  0xb9   : > { %v932_v39 = vadd.f32 %v900_v36, %v833_v3  ;;  %v348_v41 = vsel %vm314_vm3, %v1732_v22, 0.0  ;;  %v415_v38 = vsel %vm381_vm5, %v1736_v24, 0.0  ;;  %vm480_vm14 = vcmp.eq.s32.totalorder %v2123_v2, %v1746_v35 }
  0xba   : > { %v1114_v42 = vadd.f32 %v1082_v32, %v1015_v33  ;;  %v447_v43 = vadd.f32 %v415_v38, %v348_v41  ;;  %v514_v44 = vsel %vm480_vm14, %v1738_v25, 0.0  ;;  %vm579_vm15 = vcmp.eq.s32.totalorder %v2123_v2, %v1752_v48 }
  0xbb   : > { %v1031_v61 = vadd.f32 %v999_v34, %v932_v39  ;;  %v613_v63 = vsel %vm579_vm15, %v1740_v29, 0.0  ;;  %vm330_vm0 = vcmp.eq.s32.totalorder %v2126_v5, %v1730_v21  ;;  %vm397_vm1 = vcmp.eq.s32.totalorder %v2126_v5, %v1734_v23 }
  0xbc   : > { %1157 = vmatpush.msra.mxu2 %v1114_v42  ;;  %v546_v45 = vadd.f32 %v514_v44, %v447_v43  ;;  %v364_v46 = vsel %vm330_vm0, %v1732_v22, 0.0  ;;  %v431_v49 = vsel %vm397_vm1, %v1736_v24, 0.0  ;;  %vm496_vm2 = vcmp.eq.s32.totalorder %v2126_v5, %v1746_v35 }
  0xbd   : > { %v1130_v50 = vadd.f32 %v1098_v37, %v1031_v61  ;;  %v463_v2 = vadd.f32 %v431_v49, %v364_v46  ;;  %v530_v52 = vsel %vm496_vm2, %v1738_v25, 0.0  ;;  %vm595_vm4 = vcmp.eq.s32.totalorder %v2126_v5, %v1752_v48 }
  0xbe   : > { %v645_v1 = vadd.f32 %v613_v63, %v546_v45  ;;  %v629_v0 = vsel %vm595_vm4, %v1740_v29, 0.0  ;;  %v2306_v8 = vadd.s32 40, %v1707_v47  ;;  %v2309_v9 = vadd.s32 168, %v1707_v47 }
  0xbf   : > { %1177 = vmatpush.msra.mxu3 %v1130_v50  ;;  %v562_v10 = vadd.f32 %v530_v52, %v463_v2  ;;  %vm313_vm3 = vcmp.eq.s32.totalorder %v2183_v4, %v1730_v21  ;;  %vm380_vm5 = vcmp.eq.s32.totalorder %v2183_v4, %v1734_v23  ;;  %vm479_vm6 = vcmp.eq.s32.totalorder %v2183_v4, %v1746_v35 }
  0xc0   : > { %683 = vmatpush.msra.mxu0 %v645_v1  ;;  %vm782_vm7 = vcmp.eq.s32.totalorder %v2306_v8, %v1756_v53  ;;  %vm849_vm8 = vcmp.eq.s32.totalorder %v2306_v8, %v1760_v55  ;;  %vm948_vm9 = vcmp.eq.s32.totalorder %v2306_v8, %v1784_v6  ;;  %vm1047_vm10 = vcmp.eq.s32.totalorder %v2306_v8, %v1786_v7 }
  0xc1   : > { %v661_v5 = vadd.f32 %v629_v0, %v562_v10  ;;  %v816_v11 = vsel %vm782_vm7, %v1758_v54, 0.0  ;;  %v883_v12 = vsel %vm849_vm8, %v1762_v56, 0.0  ;;  %v982_v57 = vsel %vm948_vm9, %v1764_v58, 0.0 }
  0xc2   : > { %v915_v13 = vadd.f32 %v883_v12, %v816_v11  ;;  %v1081_v16 = vsel %vm1047_vm10, %v1766_v59, 0.0  ;;  %vm798_vm11 = vcmp.eq.s32.totalorder %v2309_v9, %v1756_v53  ;;  %vm865_vm12 = vcmp.eq.s32.totalorder %v2309_v9, %v1760_v55 }
  0xc3   : > { %703 = vmatpush.msra.mxu1 %v661_v5  ;;  %v832_v14 = vsel %vm798_vm11, %v1758_v54, 0.0  ;;  %v899_v19 = vsel %vm865_vm12, %v1762_v56, 0.0  ;;  %vm964_vm13 = vcmp.eq.s32.totalorder %v2309_v9, %v1784_v6  ;;  %vm1063_vm14 = vcmp.eq.s32.totalorder %v2309_v9, %v1786_v7 }
  0xc4   : > { %v1014_v51 = vadd.f32 %v982_v57, %v915_v13  ;;  %v931_v15 = vadd.f32 %v899_v19, %v832_v14  ;;  %v998_v60 = vsel %vm964_vm13, %v1764_v58, 0.0  ;;  %v1097_v20 = vsel %vm1063_vm14, %v1766_v59, 0.0 }
  0xc5   : > { %v347_v62 = vsel %vm313_vm3, %v1732_v22, 0.0  ;;  %v414_v26 = vsel %vm380_vm5, %v1736_v24, 0.0  ;;  %v513_v27 = vsel %vm479_vm6, %v1738_v25, 0.0  ;;  %vm578_vm15 = vcmp.eq.s32.totalorder %v2183_v4, %v1752_v48 }
  0xc6   : > { %v1113_v28 = vadd.f32 %v1081_v16, %v1014_v51  ;;  %v1030_v30 = vadd.f32 %v998_v60, %v931_v15  ;;  %v446_v31 = vadd.f32 %v414_v26, %v347_v62  ;;  %v612_v32 = vsel %vm578_vm15, %v1740_v29, 0.0 }
  0xc7   : > { %vm329_vm0 = vcmp.eq.s32.totalorder %v2186_v40, %v1730_v21  ;;  %vm396_vm1 = vcmp.eq.s32.totalorder %v2186_v40, %v1734_v23  ;;  %vm495_vm2 = vcmp.eq.s32.totalorder %v2186_v40, %v1746_v35  ;;  %vm594_vm4 = vcmp.eq.s32.totalorder %v2186_v40, %v1752_v48 }
  0xc8   : > { %1158 = vmatpush.msra.mxu2 %v1113_v28  ;;  %v1129_v3 = vadd.f32 %v1097_v20, %v1030_v30  ;;  %v545_v4 = vadd.f32 %v513_v27, %v446_v31  ;;  %v363_v33 = vsel %vm329_vm0, %v1732_v22, 0.0  ;;  %v430_v36 = vsel %vm396_vm1, %v1736_v24, 0.0  ;;  %v669_v20 = vld [vmem:[#allocation7] sm:$0xff] }
  0xc9   : > { %v462_v34 = vadd.f32 %v430_v36, %v363_v33  ;;  %v529_v37 = vsel %vm495_vm2, %v1738_v25, 0.0  ;;  %v628_v39 = vsel %vm594_vm4, %v1740_v29, 0.0  ;;  %v2369_v41 = vadd.s32 32, %v1707_v47  ;;  %671 = vst [vmem:[#allocation1] ss:$2 sm:$0xff] %v669_v20 }
  0xca   : > { %1178 = vmatpush.msra.mxu3 %v1129_v3  ;;  %v644_v38 = vadd.f32 %v612_v32, %v545_v4  ;;  %v2372_v42 = vadd.s32 160, %v1707_v47  ;;  %vm312_vm3 = vcmp.eq.s32.totalorder %v2246_v17, %v1730_v21  ;;  %vm379_vm5 = vcmp.eq.s32.totalorder %v2246_v17, %v1734_v23 }
  0xcb   : > { %v561_v40 = vadd.f32 %v529_v37, %v462_v34  ;;  %vm781_vm6 = vcmp.eq.s32.totalorder %v2369_v41, %v1756_v53  ;;  %vm848_vm7 = vcmp.eq.s32.totalorder %v2369_v41, %v1760_v55  ;;  %vm947_vm8 = vcmp.eq.s32.totalorder %v2369_v41, %v1784_v6 }
  0xcc   : > { %684 = vmatpush.msra.mxu0 %v644_v38  ;;  %v815_v43 = vsel %vm781_vm6, %v1758_v54, 0.0  ;;  %v882_v44 = vsel %vm848_vm7, %v1762_v56, 0.0  ;;  %v981_v61 = vsel %vm947_vm8, %v1764_v58, 0.0  ;;  %vm1046_vm9 = vcmp.eq.s32.totalorder %v2369_v41, %v1786_v7 }
  0xcd   : > { %v660_v63 = vadd.f32 %v628_v39, %v561_v40  ;;  %v914_v45 = vadd.f32 %v882_v44, %v815_v43  ;;  %v1080_v46 = vsel %vm1046_vm9, %v1766_v59, 0.0  ;;  %vm797_vm10 = vcmp.eq.s32.totalorder %v2372_v42, %v1756_v53 }
  0xce   : > { %v831_v49 = vsel %vm797_vm10, %v1758_v54, 0.0  ;;  %vm864_vm11 = vcmp.eq.s32.totalorder %v2372_v42, %v1760_v55  ;;  %vm963_vm12 = vcmp.eq.s32.totalorder %v2372_v42, %v1784_v6  ;;  %vm1062_vm13 = vcmp.eq.s32.totalorder %v2372_v42, %v1786_v7 }
  0xcf   : > { %704 = vmatpush.msra.mxu1 %v660_v63  ;;  %v1013_v50 = vadd.f32 %v981_v61, %v914_v45  ;;  %v898_v2 = vsel %vm864_vm11, %v1762_v56, 0.0  ;;  %v997_v52 = vsel %vm963_vm12, %v1764_v58, 0.0  ;;  %v1096_v1 = vsel %vm1062_vm13, %v1766_v59, 0.0 }
  0xd0   : > { %v930_v0 = vadd.f32 %v898_v2, %v831_v49  ;;  %v346_v10 = vsel %vm312_vm3, %v1732_v22, 0.0  ;;  %v413_v5 = vsel %vm379_vm5, %v1736_v24, 0.0  ;;  %vm478_vm14 = vcmp.eq.s32.totalorder %v2246_v17, %v1746_v35  ;;  %v2478_v63 = vld.sshfl [vmem:[#allocation1] sm:$0xff pattern:$0x75316420] }
  0xd1   : > { %v1112_v11 = vadd.f32 %v1080_v46, %v1013_v50  ;;  %v445_v12 = vadd.f32 %v413_v5, %v346_v10  ;;  %v512_v57 = vsel %vm478_vm14, %v1738_v25, 0.0  ;;  %vm577_vm15 = vcmp.eq.s32.totalorder %v2246_v17, %v1752_v48  ;;  %v2481_v2 = vld.sshfl [vmem:[#allocation1 + $0x8] sm:$0xff pattern:$0x75316420] }
  0xd2   : > { %v1029_v13 = vadd.f32 %v997_v52, %v930_v0  ;;  %v611_v16 = vsel %vm577_vm15, %v1740_v29, 0.0  ;;  %vm328_vm0 = vcmp.eq.s32.totalorder %v2249_v18, %v1730_v21  ;;  %vm395_vm1 = vcmp.eq.s32.totalorder %v2249_v18, %v1734_v23  ;;  %v1141_v52 = vld [vmem:[#allocation7 + $0x8] sm:$0xff] }
  0xd3   : > { %1159 = vmatpush.msra.mxu2 %v1112_v11  ;;  %v544_v14 = vadd.f32 %v512_v57, %v445_v12  ;;  %v362_v19 = vsel %vm328_vm0, %v1732_v22, 0.0  ;;  %v429_v51 = vsel %vm395_vm1, %v1736_v24, 0.0  ;;  %vm494_vm2 = vcmp.eq.s32.totalorder %v2249_v18, %v1746_v35  ;;  %1143 = vst [vmem:[#allocation1] ss:$2 sm:$0xff] %v1141_v52 }
  0xd4   : > { %v1128_v15 = vadd.f32 %v1096_v1, %v1029_v13  ;;  %v461_v17 = vadd.f32 %v429_v51, %v362_v19  ;;  %v528_v60 = vsel %vm494_vm2, %v1738_v25, 0.0  ;;  %vm593_vm4 = vcmp.eq.s32.totalorder %v2249_v18, %v1752_v48 }
  0xd5   : > { %v643_v62 = vadd.f32 %v611_v16, %v544_v14  ;;  %v627_v26 = vsel %vm593_vm4, %v1740_v29, 0.0  ;;  %v2429_v27 = vadd.s32 24, %v1707_v47  ;;  %v2432_v28 = vadd.s32 152, %v1707_v47 }
  0xd6   : > { %1179 = vmatpush.msra.mxu3 %v1128_v15  ;;  %v560_v30 = vadd.f32 %v528_v60, %v461_v17  ;;  %vm311_vm3 = vcmp.eq.s32.totalorder %v2306_v8, %v1730_v21  ;;  %vm378_vm5 = vcmp.eq.s32.totalorder %v2306_v8, %v1734_v23  ;;  %vm477_vm6 = vcmp.eq.s32.totalorder %v2306_v8, %v1746_v35 }
  0xd7   : > { %685 = vmatpush.msra.mxu0 %v643_v62  ;;  %vm780_vm7 = vcmp.eq.s32.totalorder %v2429_v27, %v1756_v53  ;;  %vm847_vm8 = vcmp.eq.s32.totalorder %v2429_v27, %v1760_v55  ;;  %vm946_vm9 = vcmp.eq.s32.totalorder %v2429_v27, %v1784_v6  ;;  %vm1045_vm10 = vcmp.eq.s32.totalorder %v2429_v27, %v1786_v7 }
  0xd8   : > { %v659_v18 = vadd.f32 %v627_v26, %v560_v30  ;;  %v814_v31 = vsel %vm780_vm7, %v1758_v54, 0.0  ;;  %v881_v32 = vsel %vm847_vm8, %v1762_v56, 0.0  ;;  %v980_v3 = vsel %vm946_vm9, %v1764_v58, 0.0 }
  0xd9   : > { %v913_v4 = vadd.f32 %v881_v32, %v814_v31  ;;  %v1079_v33 = vsel %vm1045_vm10, %v1766_v59, 0.0  ;;  %vm796_vm11 = vcmp.eq.s32.totalorder %v2432_v28, %v1756_v53  ;;  %vm863_vm12 = vcmp.eq.s32.totalorder %v2432_v28, %v1760_v55 }
  0xda   : > { %705 = vmatpush.msra.mxu1 %v659_v18  ;;  %v830_v36 = vsel %vm796_vm11, %v1758_v54, 0.0  ;;  %v897_v34 = vsel %vm863_vm12, %v1762_v56, 0.0  ;;  %vm962_vm13 = vcmp.eq.s32.totalorder %v2432_v28, %v1784_v6  ;;  %vm1061_vm14 = vcmp.eq.s32.totalorder %v2432_v28, %v1786_v7 }
  0xdb   : > { %v1012_v37 = vadd.f32 %v980_v3, %v913_v4  ;;  %v929_v39 = vadd.f32 %v897_v34, %v830_v36  ;;  %v996_v38 = vsel %vm962_vm13, %v1764_v58, 0.0  ;;  %v1095_v40 = vsel %vm1061_vm14, %v1766_v59, 0.0 }
  0xdc   : > { %v345_v43 = vsel %vm311_vm3, %v1732_v22, 0.0  ;;  %v412_v44 = vsel %vm378_vm5, %v1736_v24, 0.0  ;;  %v511_v61 = vsel %vm477_vm6, %v1738_v25, 0.0  ;;  %vm576_vm15 = vcmp.eq.s32.totalorder %v2306_v8, %v1752_v48 }
  0xdd   : > { %v1111_v45 = vadd.f32 %v1079_v33, %v1012_v37  ;;  %v1028_v46 = vadd.f32 %v996_v38, %v929_v39  ;;  %v444_v49 = vadd.f32 %v412_v44, %v345_v43  ;;  %v610_v50 = vsel %vm576_vm15, %v1740_v29, 0.0 }
  0xde   : > { %vm327_vm0 = vcmp.eq.s32.totalorder %v2309_v9, %v1730_v21  ;;  %vm394_vm1 = vcmp.eq.s32.totalorder %v2309_v9, %v1734_v23  ;;  %vm493_vm2 = vcmp.eq.s32.totalorder %v2309_v9, %v1746_v35  ;;  %vm592_vm4 = vcmp.eq.s32.totalorder %v2309_v9, %v1752_v48 }
  0xdf   : > { %1160 = vmatpush.msra.mxu2 %v1111_v45  ;;  %v1127_v8 = vadd.f32 %v1095_v40, %v1028_v46  ;;  %v543_v1 = vadd.f32 %v511_v61, %v444_v49  ;;  %v361_v0 = vsel %vm327_vm0, %v1732_v22, 0.0  ;;  %v428_v10 = vsel %vm394_vm1, %v1736_v24, 0.0 }
  0xe0   : > { %v460_v5 = vadd.f32 %v428_v10, %v361_v0  ;;  %v527_v11 = vsel %vm493_vm2, %v1738_v25, 0.0  ;;  %v626_v12 = vsel %vm592_vm4, %v1740_v29, 0.0  ;;  %v2496_v57 = vadd.s32 16, %v1707_v47 }
  0xe1   : > { %1180 = vmatpush.msra.mxu3 %v1127_v8  ;;  %v642_v13 = vadd.f32 %v610_v50, %v543_v1  ;;  %v2499_v9 = vadd.s32 144, %v1707_v47  ;;  %vm310_vm3 = vcmp.eq.s32.totalorder %v2369_v41, %v1730_v21  ;;  %vm377_vm5 = vcmp.eq.s32.totalorder %v2369_v41, %v1734_v23 }
  0xe2   : > { %v559_v16 = vadd.f32 %v527_v11, %v460_v5  ;;  %vm779_vm6 = vcmp.eq.s32.totalorder %v2496_v57, %v1756_v53  ;;  %vm846_vm7 = vcmp.eq.s32.totalorder %v2496_v57, %v1760_v55  ;;  %vm945_vm8 = vcmp.eq.s32.totalorder %v2496_v57, %v1784_v6 }
  0xe3   : > { %686 = vmatpush.msra.mxu0 %v642_v13  ;;  %v813_v14 = vsel %vm779_vm6, %v1758_v54, 0.0  ;;  %v880_v19 = vsel %vm846_vm7, %v1762_v56, 0.0  ;;  %v979_v51 = vsel %vm945_vm8, %v1764_v58, 0.0  ;;  %vm1044_vm9 = vcmp.eq.s32.totalorder %v2496_v57, %v1786_v7 }
  0xe4   : > { %v658_v15 = vadd.f32 %v626_v12, %v559_v16  ;;  %v912_v17 = vadd.f32 %v880_v19, %v813_v14  ;;  %v1078_v60 = vsel %vm1044_vm9, %v1766_v59, 0.0  ;;  %vm795_vm10 = vcmp.eq.s32.totalorder %v2499_v9, %v1756_v53 }
  0xe5   : > { %v829_v20 = vsel %vm795_vm10, %v1758_v54, 0.0  ;;  %vm862_vm11 = vcmp.eq.s32.totalorder %v2499_v9, %v1760_v55  ;;  %vm961_vm12 = vcmp.eq.s32.totalorder %v2499_v9, %v1784_v6  ;;  %vm1060_vm13 = vcmp.eq.s32.totalorder %v2499_v9, %v1786_v7 }
  0xe6   : > { %706 = vmatpush.msra.mxu1 %v658_v15  ;;  %v1011_v62 = vadd.f32 %v979_v51, %v912_v17  ;;  %v896_v26 = vsel %vm862_vm11, %v1762_v56, 0.0  ;;  %v995_v30 = vsel %vm961_vm12, %v1764_v58, 0.0  ;;  %v1094_v18 = vsel %vm1060_vm13, %v1766_v59, 0.0 }
  0xe7   : > { %v928_v31 = vadd.f32 %v896_v26, %v829_v20  ;;  %v344_v32 = vsel %vm310_vm3, %v1732_v22, 0.0  ;;  %v411_v3 = vsel %vm377_vm5, %v1736_v24, 0.0  ;;  %vm476_vm14 = vcmp.eq.s32.totalorder %v2369_v41, %v1746_v35 }
  0xe8   : > { %v1110_v4 = vadd.f32 %v1078_v60, %v1011_v62  ;;  %v443_v33 = vadd.f32 %v411_v3, %v344_v32  ;;  %v510_v36 = vsel %vm476_vm14, %v1738_v25, 0.0  ;;  %vm575_vm15 = vcmp.eq.s32.totalorder %v2369_v41, %v1752_v48 }
  0xe9   : > { %v1027_v34 = vadd.f32 %v995_v30, %v928_v31  ;;  %v609_v37 = vsel %vm575_vm15, %v1740_v29, 0.0  ;;  %vm326_vm0 = vcmp.eq.s32.totalorder %v2372_v42, %v1730_v21  ;;  %vm393_vm1 = vcmp.eq.s32.totalorder %v2372_v42, %v1734_v23 }
  0xea   : > { %1161 = vmatpush.msra.mxu2 %v1110_v4  ;;  %v542_v39 = vadd.f32 %v510_v36, %v443_v33  ;;  %v360_v38 = vsel %vm326_vm0, %v1732_v22, 0.0  ;;  %v427_v40 = vsel %vm393_vm1, %v1736_v24, 0.0  ;;  %vm492_vm2 = vcmp.eq.s32.totalorder %v2372_v42, %v1746_v35 }
  0xeb   : > { %v1126_v43 = vadd.f32 %v1094_v18, %v1027_v34  ;;  %v459_v41 = vadd.f32 %v427_v40, %v360_v38  ;;  %v526_v44 = vsel %vm492_vm2, %v1738_v25, 0.0  ;;  %vm591_vm4 = vcmp.eq.s32.totalorder %v2372_v42, %v1752_v48 }
  0xec   : > { %v641_v61 = vadd.f32 %v609_v37, %v542_v39  ;;  %v625_v45 = vsel %vm591_vm4, %v1740_v29, 0.0  ;;  %v2556_v46 = vadd.s32 8, %v1707_v47  ;;  %v2559_v49 = vadd.s32 136, %v1707_v47 }
  0xed   : > { %1181 = vmatpush.msra.mxu3 %v1126_v43  ;;  %v558_v50 = vadd.f32 %v526_v44, %v459_v41  ;;  %vm309_vm3 = vcmp.eq.s32.totalorder %v2429_v27, %v1730_v21  ;;  %vm376_vm5 = vcmp.eq.s32.totalorder %v2429_v27, %v1734_v23  ;;  %vm475_vm6 = vcmp.eq.s32.totalorder %v2429_v27, %v1746_v35 }
  0xee   : > { %687 = vmatpush.msra.mxu0 %v641_v61  ;;  %vm778_vm7 = vcmp.eq.s32.totalorder %v2556_v46, %v1756_v53  ;;  %vm845_vm8 = vcmp.eq.s32.totalorder %v2556_v46, %v1760_v55  ;;  %vm944_vm9 = vcmp.eq.s32.totalorder %v2556_v46, %v1784_v6  ;;  %vm1043_vm10 = vcmp.eq.s32.totalorder %v2556_v46, %v1786_v7 }
  0xef   : > { %v657_v42 = vadd.f32 %v625_v45, %v558_v50  ;;  %v812_v52 = vsel %vm778_vm7, %v1758_v54, 0.0  ;;  %v879_v8 = vsel %vm845_vm8, %v1762_v56, 0.0  ;;  %v978_v1 = vsel %vm944_vm9, %v1764_v58, 0.0 }
  0xf0   : > { %v911_v0 = vadd.f32 %v879_v8, %v812_v52  ;;  %v1077_v10 = vsel %vm1043_vm10, %v1766_v59, 0.0  ;;  %vm794_vm11 = vcmp.eq.s32.totalorder %v2559_v49, %v1756_v53  ;;  %vm861_vm12 = vcmp.eq.s32.totalorder %v2559_v49, %v1760_v55  ;;  %v1144_v52 = vld.sshfl [vmem:[#allocation1] sm:$0xff pattern:$0x75316420] }
  0xf1   : > { %707 = vmatpush.msra.mxu1 %v657_v42  ;;  %v828_v5 = vsel %vm794_vm11, %v1758_v54, 0.0  ;;  %v895_v11 = vsel %vm861_vm12, %v1762_v56, 0.0  ;;  %vm960_vm13 = vcmp.eq.s32.totalorder %v2559_v49, %v1784_v6  ;;  %vm1059_vm14 = vcmp.eq.s32.totalorder %v2559_v49, %v1786_v7 }
  0xf2   : > { %v1010_v12 = vadd.f32 %v978_v1, %v911_v0  ;;  %v927_v13 = vadd.f32 %v895_v11, %v828_v5  ;;  %v994_v16 = vsel %vm960_vm13, %v1764_v58, 0.0  ;;  %v1093_v14 = vsel %vm1059_vm14, %v1766_v59, 0.0  ;;  %v1145_v1 = vld.sshfl [vmem:[#allocation1 + $0x8] sm:$0xff pattern:$0x75316420] }
  0xf3   : > { %v343_v19 = vsel %vm309_vm3, %v1732_v22, 0.0  ;;  %v410_v51 = vsel %vm376_vm5, %v1736_v24, 0.0  ;;  %v509_v15 = vsel %vm475_vm6, %v1738_v25, 0.0  ;;  %vm574_vm15 = vcmp.eq.s32.totalorder %v2429_v27, %v1752_v48 }
  0xf4   : > { %v1109_v17 = vadd.f32 %v1077_v10, %v1010_v12  ;;  %v1026_v60 = vadd.f32 %v994_v16, %v927_v13  ;;  %v442_v20 = vadd.f32 %v410_v51, %v343_v19  ;;  %v608_v62 = vsel %vm574_vm15, %v1740_v29, 0.0 }
  0xf5   : > { %vm325_vm0 = vcmp.eq.s32.totalorder %v2432_v28, %v1730_v21  ;;  %vm392_vm1 = vcmp.eq.s32.totalorder %v2432_v28, %v1734_v23  ;;  %vm491_vm2 = vcmp.eq.s32.totalorder %v2432_v28, %v1746_v35  ;;  %vm590_vm4 = vcmp.eq.s32.totalorder %v2432_v28, %v1752_v48 }
  0xf6   : > { %1162 = vmatpush.msra.mxu2 %v1109_v17  ;;  %v1125_v26 = vadd.f32 %v1093_v14, %v1026_v60  ;;  %v541_v27 = vadd.f32 %v509_v15, %v442_v20  ;;  %v359_v30 = vsel %vm325_vm0, %v1732_v22, 0.0  ;;  %v426_v18 = vsel %vm392_vm1, %v1736_v24, 0.0 }
  0xf7   : > { %v458_v31 = vadd.f32 %v426_v18, %v359_v30  ;;  %v525_v32 = vsel %vm491_vm2, %v1738_v25, 0.0  ;;  %v624_v3 = vsel %vm590_vm4, %v1740_v29, 0.0  ;;  %vm777_vm3 = vcmp.eq.s32.totalorder %v1707_v47, %v1756_v53 }
  0xf8   : > { %1182 = vmatpush.msra.mxu3 %v1125_v26  ;;  %v640_v4 = vadd.f32 %v608_v62, %v541_v27  ;;  %v811_v33 = vsel %vm777_vm3, %v1758_v54, 0.0  ;;  %vm844_vm5 = vcmp.eq.s32.totalorder %v1707_v47, %v1760_v55  ;;  %vm943_vm6 = vcmp.eq.s32.totalorder %v1707_v47, %v1784_v6 }
  0xf9   : > { %v557_v28 = vadd.f32 %v525_v32, %v458_v31  ;;  %v878_v36 = vsel %vm844_vm5, %v1762_v56, 0.0  ;;  %v977_v34 = vsel %vm943_vm6, %v1764_v58, 0.0  ;;  %vm1042_vm7 = vcmp.eq.s32.totalorder %v1707_v47, %v1786_v7 }
  0xfa   : > { %688 = vmatpush.msra.mxu0 %v640_v4  ;;  %v910_v37 = vadd.f32 %v878_v36, %v811_v33  ;;  %v1076_v39 = vsel %vm1042_vm7, %v1766_v59, 0.0  ;;  %v2631_v38 = vadd.s32 128, %v1707_v47  ;;  %vm308_vm8 = vcmp.eq.s32.totalorder %v2496_v57, %v1730_v21 }
  0xfb   : > { %v656_v40 = vadd.f32 %v624_v3, %v557_v28  ;;  %v342_v43 = vsel %vm308_vm8, %v1732_v22, 0.0  ;;  %vm375_vm9 = vcmp.eq.s32.totalorder %v2496_v57, %v1734_v23  ;;  %vm474_vm10 = vcmp.eq.s32.totalorder %v2496_v57, %v1746_v35 }
  0xfc   : > { %v1009_v41 = vadd.f32 %v977_v34, %v910_v37  ;;  %vm793_vm11 = vcmp.eq.s32.totalorder %v2631_v38, %v1756_v53  ;;  %vm860_vm12 = vcmp.eq.s32.totalorder %v2631_v38, %v1760_v55  ;;  %vm959_vm13 = vcmp.eq.s32.totalorder %v2631_v38, %v1784_v6 }
  0xfd   : > { %708 = vmatpush.msra.mxu1 %v656_v40  ;;  %v827_v44 = vsel %vm793_vm11, %v1758_v54, 0.0  ;;  %v894_v61 = vsel %vm860_vm12, %v1762_v56, 0.0  ;;  %v993_v45 = vsel %vm959_vm13, %v1764_v58, 0.0  ;;  %vm1058_vm14 = vcmp.eq.s32.totalorder %v2631_v38, %v1786_v7 }
  0xfe   : > { %v1108_v50 = vadd.f32 %v1076_v39, %v1009_v41  ;;  %v926_v42 = vadd.f32 %v894_v61, %v827_v44  ;;  %v1092_v53 = vsel %vm1058_vm14, %v1766_v59, 0.0  ;;  %v409_v55 = vsel %vm375_vm9, %v1736_v24, 0.0 }
  0xff   : > { %v441_v8 = vadd.f32 %v409_v55, %v342_v43  ;;  %v508_v54 = vsel %vm474_vm10, %v1738_v25, 0.0  ;;  %vm573_vm15 = vcmp.eq.s32.totalorder %v2496_v57, %v1752_v48  ;;  %vm324_vm0 = vcmp.eq.s32.totalorder %v2499_v9, %v1730_v21 }
 0x100   : > { %1163 = vmatpush.msra.mxu2 %v1108_v50  ;;  %v1025_v56 = vadd.f32 %v993_v45, %v926_v42  ;;  %v607_v58 = vsel %vm573_vm15, %v1740_v29, 0.0  ;;  %v358_v59 = vsel %vm324_vm0, %v1732_v22, 0.0  ;;  %vm391_vm1 = vcmp.eq.s32.totalorder %v2499_v9, %v1734_v23 }
 0x101   : > { %1164 = vmatmul.f32.vlgmr.msra.gmra.mxu2 %v1144_v52  ;;  %v540_v6 = vadd.f32 %v508_v54, %v441_v8  ;;  %v425_v7 = vsel %vm391_vm1, %v1736_v24, 0.0  ;;  %vm490_vm2 = vcmp.eq.s32.totalorder %v2499_v9, %v1746_v35  ;;  %vm589_vm4 = vcmp.eq.s32.totalorder %v2499_v9, %v1752_v48 }
 0x102   : > { %v1124_v57 = vadd.f32 %v1092_v53, %v1025_v56  ;;  %v457_v0 = vadd.f32 %v425_v7, %v358_v59  ;;  %v524_v10 = vsel %vm490_vm2, %v1738_v25, 0.0  ;;  %v623_v5 = vsel %vm589_vm4, %v1740_v29, 0.0 }
 0x103   : > { %v639_v11 = vadd.f32 %v607_v58, %v540_v6  ;;  %vm307_vm3 = vcmp.eq.s32.totalorder %v2556_v46, %v1730_v21  ;;  %vm374_vm5 = vcmp.eq.s32.totalorder %v2556_v46, %v1734_v23  ;;  %vm473_vm6 = vcmp.eq.s32.totalorder %v2556_v46, %v1746_v35 }
 0x104   : > { %1183 = vmatpush.msra.mxu3 %v1124_v57  ;;  %v556_v12 = vadd.f32 %v524_v10, %v457_v0  ;;  %v341_v9 = vsel %vm307_vm3, %v1732_v22, 0.0  ;;  %v408_v13 = vsel %vm374_vm5, %v1736_v24, 0.0  ;;  %v507_v16 = vsel %vm473_vm6, %v1738_v25, 0.0 }
 0x105   : > { %1184 = vmatmul.f32.vlgmr.msra.gmra.mxu3 %v1145_v1  ;;  %689 = vmatpush.msra.mxu0 %v639_v11  ;;  %v440_v14 = vadd.f32 %v408_v13, %v341_v9  ;;  %vm572_vm7 = vcmp.eq.s32.totalorder %v2556_v46, %v1752_v48  ;;  %vm323_vm8 = vcmp.eq.s32.totalorder %v2559_v49, %v1730_v21 }
 0x106   : > { %v655_v19 = vadd.f32 %v623_v5, %v556_v12  ;;  %v606_v51 = vsel %vm572_vm7, %v1740_v29, 0.0  ;;  %v357_v15 = vsel %vm323_vm8, %v1732_v22, 0.0  ;;  %vm390_vm9 = vcmp.eq.s32.totalorder %v2559_v49, %v1734_v23 }
 0x107   : > { %v539_v17 = vadd.f32 %v507_v16, %v440_v14  ;;  %v424_v60 = vsel %vm390_vm9, %v1736_v24, 0.0  ;;  %vm489_vm10 = vcmp.eq.s32.totalorder %v2559_v49, %v1746_v35  ;;  %vm588_vm11 = vcmp.eq.s32.totalorder %v2559_v49, %v1752_v48 }
 0x108   : > { %709 = vmatpush.msra.mxu1 %v655_v19  ;;  %v456_v46 = vadd.f32 %v424_v60, %v357_v15  ;;  %v523_v20 = vsel %vm489_vm10, %v1738_v25, 0.0  ;;  %v622_v62 = vsel %vm588_vm11, %v1740_v29, 0.0  ;;  %vm306_vm12 = vcmp.eq.s32.totalorder %v1707_v47, %v1730_v21 }
 0x109   : > { %v638_v26 = vadd.f32 %v606_v51, %v539_v17  ;;  %v340_v27 = vsel %vm306_vm12, %v1732_v22, 0.0  ;;  %vm373_vm13 = vcmp.eq.s32.totalorder %v1707_v47, %v1734_v23  ;;  %vm472_vm14 = vcmp.eq.s32.totalorder %v1707_v47, %v1746_v35 }
 0x10a   : > { %v555_v30 = vadd.f32 %v523_v20, %v456_v46  ;;  %v407_v49 = vsel %vm373_vm13, %v1736_v24, 0.0  ;;  %v506_v18 = vsel %vm472_vm14, %v1738_v25, 0.0  ;;  %vm571_vm15 = vcmp.eq.s32.totalorder %v1707_v47, %v1752_v48 }
 0x10b   : > { %690 = vmatpush.msra.mxu0 %v638_v26  ;;  %v439_v31 = vadd.f32 %v407_v49, %v340_v27  ;;  %v605_v32 = vsel %vm571_vm15, %v1740_v29, 0.0  ;;  %vm322_vm0 = vcmp.eq.s32.totalorder %v2631_v38, %v1730_v21  ;;  %vm389_vm1 = vcmp.eq.s32.totalorder %v2631_v38, %v1734_v23 }
 0x10c   : > { %v654_v3 = vadd.f32 %v622_v62, %v555_v30  ;;  %v356_v4 = vsel %vm322_vm0, %v1732_v22, 0.0  ;;  %v423_v33 = vsel %vm389_vm1, %v1736_v24, 0.0  ;;  %vm488_vm2 = vcmp.eq.s32.totalorder %v2631_v38, %v1746_v35 }
 0x10d   : > { %v538_v47 = vadd.f32 %v506_v18, %v439_v31  ;;  %v455_v28 = vadd.f32 %v423_v33, %v356_v4  ;;  %v522_v36 = vsel %vm488_vm2, %v1738_v25, 0.0  ;;  %vm587_vm4 = vcmp.eq.s32.totalorder %v2631_v38, %v1752_v48 }
 0x10e   : > { %710 = vmatpush.msra.mxu1 %v654_v3  ;;  %v621_v21 = vsel %vm587_vm4, %v1740_v29, 0.0 }
 0x10f   : > { %v637_v23 = vadd.f32 %v605_v32, %v538_v47  ;;  %v554_v34 = vadd.f32 %v522_v36, %v455_v28 }
 0x111   : > { %691 = vmatpush.msra.mxu0 %v637_v23  ;;  %v653_v22 = vadd.f32 %v621_v21, %v554_v34 }
 0x112   : > { %692 = vmatmul.f32.vlgmr.msra.gmra.mxu0 %v2478_v63 }
 0x113   : > { %711 = vmatpush.msra.mxu1 %v653_v22 }
 0x114   : > { %712 = vmatmul.f32.vlgmr.msra.gmra.mxu1 %v2481_v2 }
 0x184   : > { %v1165_v24 = vpop.f32.mrf.mxu2 }
 0x188   : > { %v1185_v35 = vpop.f32.mrf.mxu3 }
 0x189   : > { %v1186_v25 = vadd.f32 %v1185_v35, %v1165_v24 }
 0x18b   : > { %1188 = vst [vmem:[%s209_s4 + $0x4] sm:$0xf] %v1186_v25 }
 0x18f   : > { %v693_v29 = vpop.f32.mrf.mxu0 }
 0x191   : > { %v713_v48 = vpop.f32.mrf.mxu1 }
 0x192   : > { %v714_v63 = vadd.f32 %v713_v48, %v693_v29 }
 0x194   : > { %716 = vst [vmem:[%s209_s4] sm:$0xf] %v714_v63 }
 0x195   : > { %1512 = shalt.err (!%p1509_p13)
}
 0x196   : > { %1343 = dma.vmem_to_hbm [thread:$0]  (%p1673_p4), %s1205_s7, 128, %s1207_s13, %s1190_s14  }
 0x197 PF: > { %s1218_s30 = sand.u32 1, %s1553_s16   ;;  %p1354_p0 = pnand %p1303_p6, %p1681_p7 }
 0x198   : > { %s1219_s22 = scalar_lea.sflag [#allocation6], %s1218_s30 }
 0x199   : > { %p1355_p2 = pneg %p1354_p0 }
 0x19b   : > { %1548 = dma.done.wait (%p1355_p2), %s1219_s22, 128  }
 0x19c   : > { %1550 = vsyncadd (%p1355_p2), %s1219_s22, 4294967168  ;;  %s28_s20 = sadd.s32 1, %s1573_s20   ;;  %s2771_s16 = smov %s1557_s17 }
 0x19d   : > { %p25_p5 = scmp.ge.s32.totalorder %s28_s20, 4   ;;  %s2772_s17 = smov %s1561_s18 }
 0x19e   : > { %s2773_s18 = smov %s1679_s11  ;;  %s2774_s19 = smov %s1569_s0 }
 0x19f   : > { %s2775_s0 = smov %s2777_s5  ;;  %27 = sbr.rel (!%p25_p5) target bundleno = 13 (0xd), region = 79 }
 0x1a4   :  { %1225 = vsyncpa [#allocation5], 1 }
 0x1a5   :  { %1227 = vsyncpa [#allocation5 + $0x1], 1 }
 0x1a6   :  { %1228 = vsyncpa [#allocation8], 1 }
 0x1a7   :  { %1229 = vsyncpa [#allocation6], 1 }
 0x1a8   :  { %1231 = vsyncpa [#allocation6 + $0x1], 1 }

</bundles_post_ra>
